<compile_context>
chip_gen: v6e
topology: v6e:2x2x1
jax: 0.10.0
libtpu: 0.0.40
codegen_flags: <defaults>
</compile_context>

<pallas_src>
import numpy as np

import jax
import jax.numpy as jnp
from jax.experimental import pallas as pl
from jax.experimental.pallas import tpu as pltpu


def _probe_roll_convention():
    """One-time check of pltpu.roll's shift convention.

    Returns "jnp" (matches jnp.roll), "reversed", or None (roll unavailable;
    fall back to wrap-around concatenation).  Guards the kernel against a
    silent semantics change without giving up the XLU-slot rolls.
    """
    def k(x_ref, o_ref):
        o_ref[...] = pltpu.roll(x_ref[...], 1, axis=0)

    x = jnp.arange(8 * 128, dtype=jnp.float32).reshape(8, 128)
    try:
        y = jax.block_until_ready(
            pl.pallas_call(k, out_shape=jax.ShapeDtypeStruct((8, 128), jnp.float32))(x))
    except Exception:
        return None
    if bool(jnp.array_equal(y, jnp.roll(x, 1, axis=0))):
        return "jnp"
    if bool(jnp.array_equal(y, jnp.roll(x, -1, axis=0))):
        return "reversed"
    return None


def _make_shift_up(mode):
    """shift_up(x, t, axis): result at index r equals x at index (r + t) % L."""
    def shift_up(x, t, axis):
        if t == 0:
            return x
        L = x.shape[axis]
        if mode == "jnp":
            return pltpu.roll(x, (L - t) % L, axis=axis)
        if mode == "reversed":
            return pltpu.roll(x, t, axis=axis)
        # Fallback: explicit wrap-around concatenate (correct, just more copies).
        hi = [slice(None)] * x.ndim
        lo = [slice(None)] * x.ndim
        hi[axis] = slice(t, None)
        lo[axis] = slice(0, t)
        return jnp.concatenate([x[tuple(hi)], x[tuple(lo)]], axis=axis)
    return shift_up


def _make_kernel(BN, Cc, CH, NC, offs, shift_up):
    W1_OFF, B1_OFF, W2_OFF, B2_OFF = offs["w1"], offs["b1"], offs["w2"], offs["b2"]
    WM_OFF, BM_OFF, SEL_OFF = offs["wm"], offs["bm"], offs["sel"]

    def kernel(c_ref, pa_ref, pb_ref, out_ref):
        c = c_ref[...]                                            # (BN, Cc)

        # conv_l1 / conv_l1_for_concat (k=3): three accumulating MXU dots on
        # row-shifted slabs against 8-aligned static slices of the weight slab.
        acc = jnp.dot(c, pa_ref[pl.ds(W1_OFF, Cc), :],
                      preferred_element_type=jnp.float32)
        acc = acc + jnp.dot(shift_up(c, 1, 0),
                            pa_ref[pl.ds(W1_OFF + Cc, Cc), :],
                            preferred_element_type=jnp.float32)
        acc = acc + jnp.dot(shift_up(c, 2, 0),
                            pa_ref[pl.ds(W1_OFF + 2 * Cc, Cc), :],
                            preferred_element_type=jnp.float32)
        y1 = jnp.maximum(acc + pa_ref[pl.ds(B1_OFF, 1), :], 0.0)  # (BN, CH)

        # maxpool1(k=3, s=2): whole-slab rolled maxima; the stride and the
        # per-sample validity are applied by the selection matrix at the end.
        p1 = jnp.maximum(jnp.maximum(y1, shift_up(y1, 1, 0)), shift_up(y1, 2, 0))

        # conv_l2 / conv_l2_for_concat (k=1): block-diagonal fused weight.
        y2 = jnp.maximum(
            jnp.dot(p1, pa_ref[pl.ds(W2_OFF, CH), :],
                    preferred_element_type=jnp.float32)
            + pa_ref[pl.ds(B2_OFF, 1), :], 0.0)                   # (BN, CH)

        # maxpool2(k=2, s=2): pool-1 neighbours sit 2 flat rows apart.
        p2 = jnp.maximum(y2, shift_up(y2, 2, 0))

        # mlp_y || mlp_z as one lane-stacked matmul (py in lanes [0:NC],
        # pz in lanes [NC:2NC], all other lanes exactly 0); py*pz via lane roll.
        m = (jnp.dot(p2, pb_ref[pl.ds(WM_OFF, CH), :],
                     preferred_element_type=jnp.float32)
             + pb_ref[pl.ds(BM_OFF, 1), :])                       # (BN, 128)
        before = m * shift_up(m, NC, 1)                           # lanes [0:NC] = py*pz

        # Per-sample mean over the valid stride-4 pooled rows, one small matmul.
        sel = pb_ref[pl.ds(SEL_OFF, 8), pl.ds(0, BN)]             # (8, BN)
        avg = jnp.dot(sel, before, preferred_element_type=jnp.float32)  # (8, 128)
        out_ref[...] = 1.0 / (1.0 + jnp.exp(-avg))

    return kernel


def make_devign_head(params, batch_size, num_node):
    """Builds the fused parameter slabs once and returns forward(gnn_out, f, labels=None)."""
    f32 = jnp.float32
    H = params["w_conv1"].shape[1]
    Cc = params["w_conv1c"].shape[1]
    F_ = Cc - H
    NC = params["w_mlp_y"].shape[-1]
    CH = H + Cc
    B, N = batch_size, num_node
    BN = B * N
    OUT_LANES, OUT_ROWS = 128, 8

    assert B <= OUT_ROWS, "TODO(synk): tile the batch over a grid axis for B > 8"
    assert 2 * NC <= OUT_LANES
    assert Cc % 8 == 0 and CH % 8 == 0

    # Pooling arithmetic of the flattened slab: conv(k=3) -> pool(3,2) ->
    # conv(k=1) -> pool(2,2).  Selected pooled rows sit at flat index b*N + 4j.
    L1 = N - 2
    P1 = (L1 - 3) // 2 + 1
    P2 = (P1 - 2) // 2 + 1
    assert P1 >= 1 and P2 >= 1, "num_node too small for the conv/pool stack"
    # Deepest conv input row read by a selected pooled row is 4*(P2-1)+6; it must
    # stay inside the sample so no cross-sample / wrapped row is ever selected.
    assert 4 * (P2 - 1) + 6 <= N - 1, "pooling window would cross a sample boundary"

    # ---- parameter slab A (lane width CH): conv1 taps, b1, conv2, b2 ----
    W1_OFF = 0
    B1_OFF = 3 * Cc
    W2_OFF = B1_OFF + 8
    B2_OFF = W2_OFF + CH
    PA_ROWS = B2_OFF + 8
    assert all(o % 8 == 0 for o in (B1_OFF, W2_OFF, B2_OFF))

    pa = jnp.zeros((PA_ROWS, CH), f32)
    zeros_fh = jnp.zeros((F_, H), f32)
    for t in range(3):
        tap = jnp.concatenate(
            [jnp.concatenate([params["w_conv1"][t].astype(f32), zeros_fh], axis=0),
             params["w_conv1c"][t].astype(f32)], axis=1)          # (Cc, CH)
        pa = pa.at[W1_OFF + t * Cc: W1_OFF + (t + 1) * Cc].set(tap)
    pa = pa.at[B1_OFF].set(
        jnp.concatenate([params["b_conv1"][0], params["b_conv1c"][0]]).astype(f32))
    w2f = jnp.concatenate([
        jnp.concatenate([params["w_conv2"].astype(f32),
                         jnp.zeros((H, Cc), f32)], axis=1),
        jnp.concatenate([jnp.zeros((Cc, H), f32),
                         params["w_conv2c"].astype(f32)], axis=1),
    ], axis=0)                                                    # (CH, CH)
    pa = pa.at[W2_OFF:W2_OFF + CH].set(w2f)
    pa = pa.at[B2_OFF].set(
        jnp.concatenate([params["b_conv2"][0], params["b_conv2c"][0]]).astype(f32))

    # ---- parameter slab B (lane width 128): fused mlp weight/bias + selection ----
    WM_OFF = 0
    BM_OFF = CH
    SEL_OFF = BM_OFF + 8
    PB_ROWS = SEL_OFF + OUT_ROWS
    assert BM_OFF % 8 == 0 and SEL_OFF % 8 == 0

    pb = jnp.zeros((PB_ROWS, OUT_LANES), f32)
    pb = pb.at[WM_OFF:WM_OFF + H, 0:NC].set(params["w_mlp_y"].astype(f32))
    pb = pb.at[WM_OFF + H:WM_OFF + CH, NC:2 * NC].set(params["w_mlp_z"].astype(f32))
    pb = pb.at[BM_OFF, 0:NC].set(params["b_mlp_y"][0].astype(f32))
    pb = pb.at[BM_OFF, NC:2 * NC].set(params["b_mlp_z"][0].astype(f32))

    sel = np.zeros((OUT_ROWS, BN), np.float32)
    for b in range(B):
        for j in range(P2):
            sel[b, b * N + 4 * j] = 1.0 / P2
    pb = pb.at[SEL_OFF:SEL_OFF + OUT_ROWS, 0:BN].set(jnp.asarray(sel))

    shift_up = _make_shift_up(_probe_roll_convention())
    kernel = _make_kernel(
        BN, Cc, CH, NC,
        dict(w1=W1_OFF, b1=B1_OFF, w2=W2_OFF, b2=B2_OFF,
             wm=WM_OFF, bm=BM_OFF, sel=SEL_OFF),
        shift_up)

    head = pl.pallas_call(
        kernel,
        out_shape=jax.ShapeDtypeStruct((OUT_ROWS, OUT_LANES), f32),
        grid=(1,),                              # single invocation: whole batch at once
        in_specs=[
            pl.BlockSpec((BN, Cc), lambda i: (0, 0)),
            pl.BlockSpec((PA_ROWS, CH), lambda i: (0, 0)),
            pl.BlockSpec((PB_ROWS, OUT_LANES), lambda i: (0, 0)),
        ],
        out_specs=pl.BlockSpec((OUT_ROWS, OUT_LANES), lambda i: (0, 0)),
        compiler_params=pltpu.CompilerParams(dimension_semantics=("arbitrary",)),
    )

    @jax.jit
    def _prob(gnn_out, adj_feature):
        c = jnp.concatenate([gnn_out.astype(f32), adj_feature.astype(f32)],
                            axis=-1).reshape(BN, Cc)
        out = head(c, pa, pb)                   # (8, 128) lane-dense store
        return out[:B, :NC]

    def forward(gnn_out, adj_feature, labels=None):
        prob = _prob(gnn_out, adj_feature)
        if labels is None:
            return prob
        labels = labels.astype(f32)
        loss = (jnp.log(prob[:, 0] + 1e-10) * labels
                + jnp.log((1.0 - prob)[:, 0] + 1e-10) * (1.0 - labels))
        return -loss.mean(), prob

    return forward


def devign_forward_ref(gnn_out, adj_feature, params):
    """Plain-JAX per-sample reference of the same math (kernel self-check)."""
    def one(x, f):
        c = jnp.concatenate([x, f], axis=-1)

        def conv3(v, w, b):
            L = v.shape[0]
            return v[0:L - 2] @ w[0] + v[1:L - 1] @ w[1] + v[2:L] @ w[2] + b

        def pool(v, k, s):
            L = v.shape[0]
            P = (L - k) // s + 1
            return jnp.stack([v[s * m:s * m + k].max(axis=0) for m in range(P)])

        y = pool(jax.nn.relu(conv3(x, params["w_conv1"], params["b_conv1"])), 3, 2)
        y = pool(jax.nn.relu(y @ params["w_conv2"] + params["b_conv2"]), 2, 2)
        z = pool(jax.nn.relu(conv3(c, params["w_conv1c"], params["b_conv1c"])), 3, 2)
        z = pool(jax.nn.relu(z @ params["w_conv2c"] + params["b_conv2c"]), 2, 2)
        before = ((y @ params["w_mlp_y"] + params["b_mlp_y"])
                  * (z @ params["w_mlp_z"] + params["b_mlp_z"]))
        return jax.nn.sigmoid(before.mean(axis=0))

    return jax.vmap(one)(gnn_out, adj_feature)


if __name__ == "__main__":
    # Keep f32 matmuls at full precision so the kernel and the plain-JAX
    # reference agree tightly.  (PyTorch runs this head in float64.)
    jax.config.update("jax_default_matmul_precision", "highest")

    # Small shapes: batch=2, num_node=16, hidden_size=32, feature_dim_size=32,
    # num_classes=2  ->  concat_dim = 64.
    B, N, H, F_, NC = 2, 16, 32, 32, 2
    Cc = H + F_

    key = jax.random.PRNGKey(0)
    ks = jax.random.split(key, 16)

    # Deterministic synthetic parameters, created in torch layouts then permuted.
    w_conv1_t = 0.1 * jax.random.normal(ks[0], (H, H, 3), jnp.float32)      # Conv1d(H,H,3)
    w_conv2_t = 0.1 * jax.random.normal(ks[1], (H, H, 1), jnp.float32)      # Conv1d(H,H,1)
    w_conv1c_t = 0.1 * jax.random.normal(ks[2], (Cc, Cc, 3), jnp.float32)   # Conv1d(Cc,Cc,3)
    w_conv2c_t = 0.1 * jax.random.normal(ks[3], (Cc, Cc, 1), jnp.float32)   # Conv1d(Cc,Cc,1)
    w_mlp_y_t = 0.1 * jax.random.normal(ks[4], (NC, H), jnp.float32)        # Linear(H, NC)
    w_mlp_z_t = 0.1 * jax.random.normal(ks[5], (NC, Cc), jnp.float32)       # Linear(Cc, NC)

    params = {
        "w_conv1": jnp.transpose(w_conv1_t, (2, 1, 0)),          # (3, C_in, C_out)
        "b_conv1": 0.1 * jax.random.normal(ks[6], (1, H), jnp.float32),
        "w_conv2": jnp.transpose(w_conv2_t, (2, 1, 0))[0],       # (C_in, C_out)
        "b_conv2": 0.1 * jax.random.normal(ks[7], (1, H), jnp.float32),
        "w_conv1c": jnp.transpose(w_conv1c_t, (2, 1, 0)),
        "b_conv1c": 0.1 * jax.random.normal(ks[8], (1, Cc), jnp.float32),
        "w_conv2c": jnp.transpose(w_conv2c_t, (2, 1, 0))[0],
        "b_conv2c": 0.1 * jax.random.normal(ks[9], (1, Cc), jnp.float32),
        "w_mlp_y": w_mlp_y_t.T,                                  # (H, NC)
        "b_mlp_y": 0.1 * jax.random.normal(ks[10], (1, NC), jnp.float32),
        "w_mlp_z": w_mlp_z_t.T,                                  # (Cc, NC)
        "b_mlp_z": 0.1 * jax.random.normal(ks[11], (1, NC), jnp.float32),
    }

    # Stand-ins for the (external) GGGNN output and preprocessed node features.
    gnn_out = jax.random.normal(ks[12], (B, N, H), jnp.float32)
    adj_feature = jax.random.normal(ks[13], (B, N, F_), jnp.float32)
    labels = jnp.array([0.0, 1.0], dtype=jnp.float32)

    forward = make_devign_head(params, B, N)      # slabs / sel built once, not per call

    prob = jax.block_until_ready(forward(gnn_out, adj_feature))
    prob_ref = jax.block_until_ready(devign_forward_ref(gnn_out, adj_feature, params))
    assert prob.shape == (B, NC)
    assert jnp.allclose(prob, prob_ref, rtol=1e-4, atol=1e-5), (prob, prob_ref)

    loss, prob2 = forward(gnn_out, adj_feature, labels=labels)
    jax.block_until_ready(loss)
    jax.block_until_ready(prob2)

    print("KERNEL_OK")
</pallas_src>

<mosaic_0001>
module attributes {stable_mosaic.version = 11 : i64} {
  func.func @k(%arg0: memref<8x128xf32, #tpu.memory_space<vmem>>, %arg1: memref<8x128xf32, #tpu.memory_space<vmem>>) attributes {dimension_semantics = [], scalar_prefetch = 0 : i64, scratch_operands = 0 : i64, tpu.core_type = #tpu.core_type<tc>} {
    %c0 = arith.constant 0 : index
    %c0_0 = arith.constant 0 : index
    %0 = vector.load %arg0[%c0, %c0_0] : memref<8x128xf32, #tpu.memory_space<vmem>>, vector<8x128xf32>
    %c1_i32 = arith.constant 1 : i32
    %1 = tpu.dynamic_rotate %0 by %c1_i32 dim 0 : vector<8x128xf32>, i32 -> vector<8x128xf32>
    %c0_1 = arith.constant 0 : index
    %c0_2 = arith.constant 0 : index
    %2 = vector.load %arg1[%c0_1, %c0_2] : memref<8x128xf32, #tpu.memory_space<vmem>>, vector<8x128xf32>
    tpu.vector_store %arg1[%c0_1, %c0_2], %1 {strides = array<i32>} : memref<8x128xf32, #tpu.memory_space<vmem>>, vector<8x128xf32>,
    return
  }
}

module attributes {stable_mosaic.version = 11 : i64} {
  func.func @kernel(%arg0: i32, %arg1: memref<32x64xf32, #tpu.memory_space<vmem>>, %arg2: memref<304x96xf32, #tpu.memory_space<vmem>>, %arg3: memref<112x128xf32, #tpu.memory_space<vmem>>, %arg4: memref<8x128xf32, #tpu.memory_space<vmem>>) attributes {dimension_semantics = [#tpu.dimension_semantics<arbitrary>], iteration_bounds = array<i64: 1>, scalar_prefetch = 0 : i64, scratch_operands = 0 : i64, tpu.core_type = #tpu.core_type<tc>, window_params = [{pipeline_mode = #tpu.pipeline_mode<synchronous>, transform_indices = @transform_0, window_bounds = array<i64: 32, 64>}, {pipeline_mode = #tpu.pipeline_mode<synchronous>, transform_indices = @transform_1, window_bounds = array<i64: 304, 96>}, {pipeline_mode = #tpu.pipeline_mode<synchronous>, transform_indices = @transform_2, window_bounds = array<i64: 112, 128>}, {pipeline_mode = #tpu.pipeline_mode<synchronous>, transform_indices = @transform_3, window_bounds = array<i64: 8, 128>}]} {
    %c0 = arith.constant 0 : index
    %c0_0 = arith.constant 0 : index
    %0 = vector.load %arg1[%c0, %c0_0] : memref<32x64xf32, #tpu.memory_space<vmem>>, vector<32x64xf32>
    %c0_1 = arith.constant 0 : index
    %c0_2 = arith.constant 0 : index
    %1 = vector.load %arg2[%c0_1, %c0_2] : memref<304x96xf32, #tpu.memory_space<vmem>>, vector<64x96xf32>
    %cst = arith.constant dense<0.000000e+00> : vector<32x96xf32>
    %2 = tpu.matmul %0, %1, %cst {dimension_numbers = #tpu.dot_dimension_numbers<[1], [0], [0], [1], [0, 0, 1, 1], [], []>, precision = #tpu.contract_precision<fp32>} : vector<32x64xf32>, vector<64x96xf32>, vector<32x96xf32> -> vector<32x96xf32>
    %3 = vector.extract_strided_slice %0 {offsets = [1, 0], sizes = [31, 64], strides = [1, 1]} : vector<32x64xf32> to vector<31x64xf32>
    %4 = vector.extract_strided_slice %0 {offsets = [0, 0], sizes = [1, 64], strides = [1, 1]} : vector<32x64xf32> to vector<1x64xf32>
    %5 = tpu.concatenate %3, %4 in 0 : vector<31x64xf32>, vector<1x64xf32> -> vector<32x64xf32>
    %c64 = arith.constant 64 : index
    %c0_3 = arith.constant 0 : index
    %6 = vector.load %arg2[%c64, %c0_3] : memref<304x96xf32, #tpu.memory_space<vmem>>, vector<64x96xf32>
    %cst_4 = arith.constant dense<0.000000e+00> : vector<32x96xf32>
    %7 = tpu.matmul %5, %6, %cst_4 {dimension_numbers = #tpu.dot_dimension_numbers<[1], [0], [0], [1], [0, 0, 1, 1], [], []>, precision = #tpu.contract_precision<fp32>} : vector<32x64xf32>, vector<64x96xf32>, vector<32x96xf32> -> vector<32x96xf32>
    %8 = arith.addf %2, %7 : vector<32x96xf32>
    %9 = vector.extract_strided_slice %0 {offsets = [2, 0], sizes = [30, 64], strides = [1, 1]} : vector<32x64xf32> to vector<30x64xf32>
    %10 = vector.extract_strided_slice %0 {offsets = [0, 0], sizes = [2, 64], strides = [1, 1]} : vector<32x64xf32> to vector<2x64xf32>
    %11 = tpu.concatenate %9, %10 in 0 : vector<30x64xf32>, vector<2x64xf32> -> vector<32x64xf32>
    %c128 = arith.constant 128 : index
    %c0_5 = arith.constant 0 : index
    %12 = vector.load %arg2[%c128, %c0_5] : memref<304x96xf32, #tpu.memory_space<vmem>>, vector<64x96xf32>
    %cst_6 = arith.constant dense<0.000000e+00> : vector<32x96xf32>
    %13 = tpu.matmul %11, %12, %cst_6 {dimension_numbers = #tpu.dot_dimension_numbers<[1], [0], [0], [1], [0, 0, 1, 1], [], []>, precision = #tpu.contract_precision<fp32>} : vector<32x64xf32>, vector<64x96xf32>, vector<32x96xf32> -> vector<32x96xf32>
    %14 = arith.addf %8, %13 : vector<32x96xf32>
    %c192 = arith.constant 192 : index
    %c0_7 = arith.constant 0 : index
    %15 = vector.load %arg2[%c192, %c0_7] : memref<304x96xf32, #tpu.memory_space<vmem>>, vector<1x96xf32>
    %16 = vector.broadcast %15 : vector<1x96xf32> to vector<32x96xf32>
    %17 = arith.addf %14, %16 : vector<32x96xf32>
    %cst_8 = arith.constant 0.000000e+00 : f32
    %18 = vector.broadcast %cst_8 : f32 to vector<32x96xf32>
    %19 = arith.maximumf %17, %18 : vector<32x96xf32>
    %20 = vector.extract_strided_slice %19 {offsets = [1, 0], sizes = [31, 96], strides = [1, 1]} : vector<32x96xf32> to vector<31x96xf32>
    %21 = vector.extract_strided_slice %19 {offsets = [0, 0], sizes = [1, 96], strides = [1, 1]} : vector<32x96xf32> to vector<1x96xf32>
    %22 = tpu.concatenate %20, %21 in 0 : vector<31x96xf32>, vector<1x96xf32> -> vector<32x96xf32>
    %23 = arith.maximumf %19, %22 : vector<32x96xf32>
    %24 = vector.extract_strided_slice %19 {offsets = [2, 0], sizes = [30, 96], strides = [1, 1]} : vector<32x96xf32> to vector<30x96xf32>
    %25 = vector.extract_strided_slice %19 {offsets = [0, 0], sizes = [2, 96], strides = [1, 1]} : vector<32x96xf32> to vector<2x96xf32>
    %26 = tpu.concatenate %24, %25 in 0 : vector<30x96xf32>, vector<2x96xf32> -> vector<32x96xf32>
    %27 = arith.maximumf %23, %26 : vector<32x96xf32>
    %c200 = arith.constant 200 : index
    %c0_9 = arith.constant 0 : index
    %28 = vector.load %arg2[%c200, %c0_9] : memref<304x96xf32, #tpu.memory_space<vmem>>, vector<96x96xf32>
    %cst_10 = arith.constant dense<0.000000e+00> : vector<32x96xf32>
    %29 = tpu.matmul %27, %28, %cst_10 {dimension_numbers = #tpu.dot_dimension_numbers<[1], [0], [0], [1], [0, 0, 1, 1], [], []>, precision = #tpu.contract_precision<fp32>} : vector<32x96xf32>, vector<96x96xf32>, vector<32x96xf32> -> vector<32x96xf32>
    %c296 = arith.constant 296 : index
    %c0_11 = arith.constant 0 : index
    %30 = vector.load %arg2[%c296, %c0_11] : memref<304x96xf32, #tpu.memory_space<vmem>>, vector<1x96xf32>
    %31 = vector.broadcast %30 : vector<1x96xf32> to vector<32x96xf32>
    %32 = arith.addf %29, %31 : vector<32x96xf32>
    %cst_12 = arith.constant 0.000000e+00 : f32
    %33 = vector.broadcast %cst_12 : f32 to vector<32x96xf32>
    %34 = arith.maximumf %32, %33 : vector<32x96xf32>
    %35 = vector.extract_strided_slice %34 {offsets = [2, 0], sizes = [30, 96], strides = [1, 1]} : vector<32x96xf32> to vector<30x96xf32>
    %36 = vector.extract_strided_slice %34 {offsets = [0, 0], sizes = [2, 96], strides = [1, 1]} : vector<32x96xf32> to vector<2x96xf32>
    %37 = tpu.concatenate %35, %36 in 0 : vector<30x96xf32>, vector<2x96xf32> -> vector<32x96xf32>
    %38 = arith.maximumf %34, %37 : vector<32x96xf32>
    %c0_13 = arith.constant 0 : index
    %c0_14 = arith.constant 0 : index
    %39 = vector.load %arg3[%c0_13, %c0_14] : memref<112x128xf32, #tpu.memory_space<vmem>>, vector<96x128xf32>
    %cst_15 = arith.constant dense<0.000000e+00> : vector<32x128xf32>
    %40 = tpu.matmul %38, %39, %cst_15 {dimension_numbers = #tpu.dot_dimension_numbers<[1], [0], [0], [1], [0, 0, 1, 1], [], []>, precision = #tpu.contract_precision<fp32>} : vector<32x96xf32>, vector<96x128xf32>, vector<32x128xf32> -> vector<32x128xf32>
    %c96 = arith.constant 96 : index
    %c0_16 = arith.constant 0 : index
    %41 = vector.load %arg3[%c96, %c0_16] : memref<112x128xf32, #tpu.memory_space<vmem>>, vector<1x128xf32>
    %42 = vector.broadcast %41 : vector<1x128xf32> to vector<32x128xf32>
    %43 = arith.addf %40, %42 : vector<32x128xf32>
    %44 = vector.extract_strided_slice %43 {offsets = [0, 2], sizes = [32, 126], strides = [1, 1]} : vector<32x128xf32> to vector<32x126xf32>
    %45 = vector.extract_strided_slice %43 {offsets = [0, 0], sizes = [32, 2], strides = [1, 1]} : vector<32x128xf32> to vector<32x2xf32>
    %46 = tpu.concatenate %44, %45 in 1 : vector<32x126xf32>, vector<32x2xf32> -> vector<32x128xf32>
    %47 = arith.mulf %43, %46 : vector<32x128xf32>
    %c104 = arith.constant 104 : index
    %c0_17 = arith.constant 0 : index
    %48 = vector.load %arg3[%c104, %c0_17] : memref<112x128xf32, #tpu.memory_space<vmem>>, vector<8x32xf32>
    %cst_18 = arith.constant dense<0.000000e+00> : vector<8x128xf32>
    %49 = tpu.matmul %48, %47, %cst_18 {dimension_numbers = #tpu.dot_dimension_numbers<[1], [0], [0], [1], [0, 0, 1, 1], [], []>, precision = #tpu.contract_precision<fp32>} : vector<8x32xf32>, vector<32x128xf32>, vector<8x128xf32> -> vector<8x128xf32>
    %cst_19 = arith.constant 0.000000e+00 : f32
    %50 = vector.broadcast %cst_19 : f32 to vector<8x128xf32>
    %51 = arith.subf %50, %49 : vector<8x128xf32>
    %52 = math.exp %51 : vector<8x128xf32>
    %cst_20 = arith.constant 1.000000e+00 : f32
    %53 = vector.broadcast %cst_20 : f32 to vector<8x128xf32>
    %54 = arith.addf %53, %52 : vector<8x128xf32>
    %cst_21 = arith.constant 1.000000e+00 : f32
    %55 = vector.broadcast %cst_21 : f32 to vector<8x128xf32>
    %56 = arith.divf %55, %54 : vector<8x128xf32>
    %c0_22 = arith.constant 0 : index
    %c0_23 = arith.constant 0 : index
    %57 = vector.load %arg4[%c0_22, %c0_23] : memref<8x128xf32, #tpu.memory_space<vmem>>, vector<8x128xf32>
    tpu.vector_store %arg4[%c0_22, %c0_23], %56 {strides = array<i32>} : memref<8x128xf32, #tpu.memory_space<vmem>>, vector<8x128xf32>,
    return
  }
  func.func @transform_0(%arg0: i32) -> (i32, i32) {
    %c0_i32 = arith.constant 0 : i32
    %c0_i32_0 = arith.constant 0 : i32
    %c0_i32_1 = arith.constant 0 : i32
    return %c0_i32, %c0_i32_0 : i32, i32
  }
  func.func @transform_1(%arg0: i32) -> (i32, i32) {
    %c0_i32 = arith.constant 0 : i32
    %c0_i32_0 = arith.constant 0 : i32
    %c0_i32_1 = arith.constant 0 : i32
    return %c0_i32, %c0_i32_0 : i32, i32
  }
  func.func @transform_2(%arg0: i32) -> (i32, i32) {
    %c0_i32 = arith.constant 0 : i32
    %c0_i32_0 = arith.constant 0 : i32
    %c0_i32_1 = arith.constant 0 : i32
    return %c0_i32, %c0_i32_0 : i32, i32
  }
  func.func @transform_3(%arg0: i32) -> (i32, i32) {
    %c0_i32 = arith.constant 0 : i32
    %c0_i32_0 = arith.constant 0 : i32
    %c0_i32_1 = arith.constant 0 : i32
    return %c0_i32, %c0_i32_0 : i32, i32
  }
}

</mosaic_0001>

<bundles_post_ra>
// kernel: tpu_custom_call.1
= control target key start
LH: loop header
LB: loop body
LE: loop exit
PB: predicated region body
PF: predicated region fallthrough
CT: control target
= control target key end

     0   :  { %6 = vsyncpa [#allocation3], 0  ;;  %s103_s0 = inlined_call_operand.hbm [shape: f32[8,128], index: 0, kind: input, shape index: {}]   ;;  %s104_s1 = inlined_call_operand.hbm [shape: f32[8,128], index: 1, kind: output, shape index: {}]  }
   0x1   :  { %7 = vsyncpa [#allocation4], 0  ;;  %s85_s6 = smov [#allocation2]  }
   0x2   :  { %s14_s7 = sshll.u32 %s85_s6, 4  ;;  %s15_s7 = int_to_ptr.vmem [resolvable:$true] %s14_s7 }
   0x3   :  { %s49_s8 = scalar_lea.vmem %s15_s7, 128  ;;  %p54_p1 = scmp.lt.s32.totalorder %s15_s7, %s15_s7 }
   0x4   :  { %p50_p0 = scmp.ne.s32.totalorder %s15_s7, %s49_s8  ;;  %p55_p2 = scmp.lt.s32.totalorder %s49_s8, %s49_s8 }
   0x6   :  { %p56_p3 = por %p55_p2, %p54_p1 }
   0x8   :  { %p57_p4 = pnand %p56_p3, %p50_p0 }
   0xa   :  { %60 = shalt.err (!%p57_p4)
}
   0xb   :  { %17 = dma.hbm_to_vmem [thread:$0]  %s103_s0, 128, %s15_s7, [#allocation3]  }
   0xc   :  { %81 = dma.done.wait [#allocation3], 128  }
   0xd   :  { %82 = vsyncadd [#allocation3], 4294967168  ;;  %s86_s11 = smov [#allocation5]   ;;  %v21_v0 = vld [vmem:[#allocation2] sm:$0xff] }
   0xe   :  { %s30_s12 = sshll.u32 %s86_s11, 4  ;;  %v22_v1 = vrot.slane %v21_v0, 7  ;;  %s31_s12 = int_to_ptr.vmem [resolvable:$true] %s30_s12 }
   0xf   :  { %s61_s13 = scalar_lea.vmem %s31_s12, 128  ;;  %p66_p6 = scmp.lt.s32.totalorder %s31_s12, %s31_s12 }
  0x10   :  { %23 = vst [vmem:[#allocation5] sm:$0xff] %v22_v1  ;;  %p62_p5 = scmp.ne.s32.totalorder %s31_s12, %s61_s13  ;;  %p67_p7 = scmp.lt.s32.totalorder %s61_s13, %s61_s13 }
  0x12   :  { %p68_p8 = por %p67_p7, %p66_p6 }
  0x14   :  { %p69_p9 = pnand %p68_p8, %p62_p5 }
  0x16   :  { %72 = shalt.err (!%p69_p9)
}
  0x17   :  { %33 = dma.vmem_to_hbm [thread:$0]  %s31_s12, 128, %s104_s1, [#allocation4]  }
  0x18   :  { %83 = dma.done.wait [#allocation4], 128  }
  0x19   :  { %84 = vsyncadd [#allocation4], 4294967168 }
  0x1a   :  { %37 = vsyncpa [#allocation3], 1 }
  0x1b   :  { %38 = vsyncpa [#allocation4], 1 }

// kernel: _prob.1
= control target key start
LH: loop header
LB: loop body
LE: loop exit
PB: predicated region body
PF: predicated region fallthrough
CT: control target
= control target key end

     0   :  { %8 = vsyncpa [#allocation3], 0  ;;  %s7025_s0 = inlined_call_operand.vmem [shape: f32[32,64], index: 0, kind: input, shape index: {}]   ;;  %s7026_s1 = inlined_call_operand.hbm [shape: f32[304,96], index: 1, kind: input, shape index: {}]   ;;  %s7027_s2 = inlined_call_operand.hbm [shape: f32[112,128], index: 2, kind: input, shape index: {}]   ;;  %s7028_s3 = inlined_call_operand.vmem [shape: f32[8,128], index: 3, kind: output, shape index: {}]  }
   0x1   :  { %9 = vsyncpa [#allocation5], 0  ;;  %s5537_s12 = smov [#allocation2]  }
   0x2   :  { %s17_s13 = sshll.u32 %s5537_s12, 4  ;;  %s18_s13 = int_to_ptr.vmem [resolvable:$true] %s17_s13 }
   0x3   :  { %s5501_s14 = scalar_lea.vmem %s18_s13, 4864  ;;  %p5506_p1 = scmp.lt.s32.totalorder %s18_s13, %s18_s13 }
   0x4   :  { %p5502_p0 = scmp.ne.s32.totalorder %s18_s13, %s5501_s14  ;;  %p5507_p2 = scmp.lt.s32.totalorder %s5501_s14, %s5501_s14 }
   0x6   :  { %p5508_p3 = por %p5507_p2, %p5506_p1 }
   0x8   :  { %p5509_p4 = pnand %p5508_p3, %p5502_p0 }
   0xa   :  { %5512 = shalt.err (!%p5509_p4)
}
   0xb   :  { %s5538_s15 = smov 128   ;;  %s5539_s16 = smov 8  }
   0xc   :  { %23 = dma.hbm_to_vmem [thread:$0]  %s7026_s1, 4864, %s18_s13, [#allocation3], %s5538_s15, %s5538_s15, %s5539_s16  }
   0xd   :  { %s5540_s19 = smov [#allocation4]  }
   0xe   :  { %s29_s20 = sshll.u32 %s5540_s19, 4  ;;  %s30_s20 = int_to_ptr.vmem [resolvable:$true] %s29_s20 }
   0xf   :  { %s5521_s21 = scalar_lea.vmem %s30_s20, 1792  ;;  %p5526_p6 = scmp.lt.s32.totalorder %s30_s20, %s30_s20 }
  0x10   :  { %p5522_p5 = scmp.ne.s32.totalorder %s30_s20, %s5521_s21  ;;  %p5527_p7 = scmp.lt.s32.totalorder %s5521_s21, %s5521_s21 }
  0x12   :  { %p5528_p8 = por %p5527_p7, %p5526_p6 }
  0x14   :  { %p5529_p9 = pnand %p5528_p8, %p5522_p5 }
  0x16   :  { %5532 = shalt.err (!%p5529_p9)
}
  0x17   :  { %35 = dma.hbm_to_vmem [thread:$0]  %s7027_s2, 1792, %s30_s20, [#allocation5], %s5538_s15, %s5538_s15, %s5539_s16  }
  0x18   :  { %5533 = dma.done.wait [#allocation3], 4864  }
  0x19   :  { %5534 = vsyncadd [#allocation3], 4294962432 }
  0x1a   :  { %5535 = dma.done.wait [#allocation5], 1792  }
  0x1b   :  { %5536 = vsyncadd [#allocation5], 4294965504  ;;  %v76_v0 = vld [vmem:[#allocation2 + $0x78] sm:$0xff]  ;;  %v75_v1 = vld [vmem:[#allocation2 + $0x70] sm:$0xff]  ;;  %vm58_vm0 = vcmask 1046528   ;;  %vm77_vm1 = vcmask 523264  }
  0x1c   :  { %v74_v2 = vld [vmem:[#allocation2 + $0x68] sm:$0xff]  ;;  %v5570_v3 = vand.u32 4294901760, %v76_v0  ;;  %v5572_v4 = vand.u32 4294901760, %v75_v1  ;;  %v73_v6 = vld [vmem:[#allocation2 + $0x60] sm:$0xff]  ;;  %v72_v7 = vld [vmem:[#allocation2 + $0x58] sm:$0xff]  ;;  %vm1427_vm2 = vcmask 1045504  }
  0x1d   :  { %v5574_v5 = vand.u32 4294901760, %v74_v2  ;;  %v71_v8 = vld [vmem:[#allocation2 + $0x50] sm:$0xff]  ;;  %v5576_v9 = vand.u32 4294901760, %v73_v6  ;;  %v5578_v10 = vand.u32 4294901760, %v72_v7  ;;  %v70_v11 = vld [vmem:[#allocation2 + $0x48] sm:$0xff]  ;;  %v5583_v12 = vld [vmem:[%s7025_s0] sm:$0xff] }
  0x1e   :  { %4660 = vmatprep.subr.mxu0 %v5570_v3  ;;  %v5587_v13 = vsub.f32 %v76_v0, %v5570_v3  ;;  %v5590_v14 = vsub.f32 %v75_v1, %v5572_v4  ;;  %v69_v16 = vld [vmem:[#allocation2 + $0x40] sm:$0xff]  ;;  %v5598_v17 = vld [vmem:[%s7025_s0 + $0x8] sm:$0xff]  ;;  %v5601_v18 = vand.u32 4294901760, %v71_v8  ;;  %v59_v20 = vrot.slane %v5583_v12, 1  ;;  %v5623_v26 = vld [vmem:[%s7025_s0 + $0x10] sm:$0xff] }
  0x1f   :  { %v5593_v15 = vsub.f32 %v74_v2, %v5574_v5  ;;  %4661 = vmatpush3.msra.mxu0 %v5570_v3  ;;  %v5604_v19 = vsub.f32 %v73_v6, %v5576_v9  ;;  %v60_v21 = vrot.slane %v5598_v17, 1  ;;  %v5615_v24 = vand.u32 4294901760, %v70_v11  ;;  %v5658_v41 = vld [vmem:[%s7025_s0 + $0x18] sm:$0xff]  ;;  %s5542_s0 = smov 126  }
  0x20   :  { %4662 = vmatprep.subr.mxu0 %v5572_v4  ;;  %v5610_v22 = vand.u32 4294901760, %v5587_v13  ;;  %v5613_v23 = vand.u32 4294901760, %v5590_v14  ;;  %v5626_v27 = vand.u32 4294901760, %v69_v16  ;;  %v5635_v30 = vsub.f32 %v72_v7, %v5578_v10 }
  0x21   :  { %v5618_v25 = vand.u32 4294901760, %v5593_v15  ;;  %4663 = vmatpush3.msra.mxu0 %v5572_v4  ;;  %v5629_v28 = vand.u32 4294901760, %v5604_v19  ;;  %v61_v29 = vsel %vm58_vm0, %v59_v20, %v60_v21  ;;  %v62_v37 = vrot.slane %v5623_v26, 1 }
  0x22   :  { %4664 = vmatprep.subr.mxu0 %v5574_v5  ;;  %v220_v31 = vsub.f32 %v5587_v13, %v5610_v22  ;;  %v227_v32 = vsub.f32 %v5590_v14, %v5613_v23  ;;  %v78_v34 = vsel %vm77_vm1, %v61_v29, 0  ;;  %v5649_v36 = vand.u32 4294901760, %v5635_v30 }
  0x23   :  { %v234_v33 = vsub.f32 %v5593_v15, %v5618_v25  ;;  %4665 = vmatpush3.msra.mxu0 %v5574_v5  ;;  %v5646_v35 = vand.u32 4294901760, %v78_v34  ;;  %v241_v40 = vsub.f32 %v5604_v19, %v5629_v28  ;;  %v63_v45 = vsel %vm58_vm0, %v60_v21, %v62_v37 }
  0x24   :  { %4666 = vmatprep.subr.mxu0 %v5576_v9  ;;  %v221_v38 = vand.u32 4294901760, %v220_v31  ;;  %v228_v39 = vand.u32 4294901760, %v227_v32  ;;  %v248_v44 = vsub.f32 %v5635_v30, %v5649_v36  ;;  %v80_v46 = vsel %vm77_vm1, %v63_v45, 0 }
  0x25   :  { %4667 = vmatpush3.msra.mxu0 %v5576_v9  ;;  %v235_v42 = vand.u32 4294901760, %v234_v33  ;;  %v5662_v43 = vsub.f32 %v78_v34, %v5646_v35  ;;  %4698 = vmatprep.mubr.f32.mxu1 %v5646_v35  ;;  %v5671_v47 = vsub.f32 %v71_v8, %v5601_v18  ;;  %v5674_v48 = vsub.f32 %v70_v11, %v5615_v24 }
  0x26   :  { %4668 = vmatprep.subr.mxu0 %v5578_v10  ;;  %4682 = vmatprep.subr.mxu1 %v221_v38  ;;  %v5677_v49 = vsub.f32 %v69_v16, %v5626_v27  ;;  %v5681_v51 = vand.u32 4294901760, %v80_v46  ;;  %v64_v52 = vrot.slane %v5658_v41, 1  ;;  %v242_v53 = vand.u32 4294901760, %v241_v40 }
  0x27   :  { %4669 = vmatpush3.msra.mxu0 %v5578_v10  ;;  %4683 = vmatpush3.msra.mxu1 %v221_v38  ;;  %v162_v50 = vand.u32 4294901760, %v5662_v43  ;;  %v5686_v54 = vand.u32 4294901760, %v5671_v47  ;;  %v5689_v55 = vand.u32 4294901760, %v5674_v48  ;;  %v249_v60 = vand.u32 4294901760, %v248_v44 }
  0x28   :  { %4670 = vmatprep.subr.mxu0 %v5601_v18  ;;  %4684 = vmatprep.subr.mxu1 %v228_v39  ;;  %v5692_v56 = vand.u32 4294901760, %v5677_v49  ;;  %v5699_v58 = vsub.f32 %v80_v46, %v5681_v51  ;;  %v65_v59 = vsel %vm58_vm0, %v62_v37, %v64_v52  ;;  %v68_v6 = vsel %vm58_vm0, %v64_v52, %v59_v20  ;;  %v53_v46 = vld [vmem:[#allocation2 + $0x38] sm:$0xff]  ;;  %v50_v52 = vld [vmem:[#allocation2 + $0x20] sm:$0xff] }
  0x29   :  { %4671 = vmatpush3.msra.mxu0 %v5601_v18  ;;  %4685 = vmatpush3.msra.mxu1 %v228_v39  ;;  %v163_v57 = vsub.f32 %v5662_v43, %v162_v50  ;;  %v255_v61 = vsub.f32 %v5671_v47, %v5686_v54  ;;  %v262_v62 = vsub.f32 %v5674_v48, %v5689_v55  ;;  %v82_v63 = vsel %vm77_vm1, %v65_v59, 0 }
  0x2a   :  { %4672 = vmatprep.subr.mxu0 %v5615_v24  ;;  %4686 = vmatprep.subr.mxu1 %v235_v42  ;;  %v172_v1 = vand.u32 4294901760, %v5699_v58  ;;  %v5710_v2 = vand.u32 4294901760, %v82_v63  ;;  %v269_v8 = vsub.f32 %v5677_v49, %v5692_v56  ;;  %v85_v11 = vsel %vm77_vm1, %v68_v6, 0 }
  0x2b   :  { %4673 = vmatpush3.msra.mxu0 %v5615_v24  ;;  %4687 = vmatpush3.msra.mxu1 %v235_v42  ;;  %v164_v0 = vand.u32 4294901760, %v163_v57  ;;  %v256_v7 = vand.u32 4294901760, %v255_v61  ;;  %v5726_v20 = vand.u32 4294901760, %v85_v11  ;;  %v263_v29 = vand.u32 4294901760, %v262_v62 }
  0x2c   :  { %4674 = vmatprep.subr.mxu0 %v5626_v27  ;;  %4688 = vmatprep.subr.mxu1 %v242_v53  ;;  %v173_v16 = vsub.f32 %v5699_v58, %v172_v1  ;;  %v5724_v21 = vsub.f32 %v82_v63, %v5710_v2  ;;  %v270_v34 = vand.u32 4294901760, %v269_v8  ;;  %v1429_v40 = vrot.slane %v5598_v17, 2 }
  0x2d   :  { %4675 = vmatpush3.msra.mxu0 %v5626_v27  ;;  %4689 = vmatpush3.msra.mxu1 %v242_v53  ;;  %v5731_v33 = vsub.f32 %v85_v11, %v5726_v20  ;;  %v753_v53 = vsel %vm77_vm1, %v5583_v12, 0  ;;  %v5848_v57 = vand.u32 4294901760, %v50_v52  ;;  %v46_v11 = vld [vmem:[#allocation2] sm:$0xff]  ;;  %vm2193_vm3 = vcmask 785408  }
  0x2e   :  { %4676 = vmatprep.mubr.f32.mxu0 %v164_v0  ;;  %4690 = vmatprep.subr.mxu1 %v249_v60  ;;  %v174_v31 = vand.u32 4294901760, %v173_v16  ;;  %v182_v32 = vand.u32 4294901760, %v5724_v21  ;;  %vm5543_vm4 = vmmov 0   ;;  %vm3717_vm5 = vcmask 261120  }
  0x2f   :  { %4704 = vmatprep.subr.mxu0 %v5587_v13  ;;  %4691 = vmatpush3.msra.mxu1 %v249_v60  ;;  %v192_v37 = vand.u32 4294901760, %v5731_v33  ;;  %v5874_v61 = vsub.f32 %v50_v52, %v5848_v57 }
  0x30   :  { %4692 = vmatprep.subr.mxu1 %v256_v7  ;;  %4677 = vmatmul.mubr.f32.vlgmr.msra.gmra.mxu0 %v174_v31  ;;  %v183_v38 = vsub.f32 %v5724_v21, %v182_v32 }
  0x31   :  { %4693 = vmatpush3.msra.mxu1 %v256_v7  ;;  %4705 = vmatpush3.msra.mxu0 %v5587_v13  ;;  %v193_v39 = vsub.f32 %v5731_v33, %v192_v37  ;;  %v5910_v16 = vand.u32 4294901760, %v5874_v61 }
  0x32   :  { %4694 = vmatprep.subr.mxu1 %v263_v29  ;;  %4706 = vmatprep.subr.mxu0 %v5590_v14  ;;  %v184_v13 = vand.u32 4294901760, %v183_v38 }
  0x33   :  { %4695 = vmatpush3.msra.mxu1 %v263_v29  ;;  %4707 = vmatpush3.msra.mxu0 %v5590_v14  ;;  %v5750_v14 = vsel %vm77_vm1, %v5623_v26, 0 }
  0x34   :  { %4696 = vmatprep.subr.mxu1 %v270_v34  ;;  %4708 = vmatprep.subr.mxu0 %v5593_v15  ;;  %v5896_v7 = vand.u32 4294901760, %v5750_v14 }
  0x35   :  { %4697 = vmatpush3.msra.mxu1 %v270_v34  ;;  %4709 = vmatpush3.msra.mxu0 %v5593_v15  ;;  %v194_v15 = vand.u32 4294901760, %v193_v39  ;;  %v5924_v34 = vand.u32 4294901760, %v46_v11 }
  0x36   :  { %4699 = vmatmul.mubr.f32.vlgmr.msra.gmra.mxu1 %v5681_v51  ;;  %4710 = vmatprep.subr.mxu0 %v5604_v19 }
  0x37   :  { %4726 = vmatprep.subr.mxu1 %v5570_v3  ;;  %4711 = vmatpush3.msra.mxu0 %v5604_v19  ;;  %v1431_v19 = vrot.slane %v5623_v26, 2 }
  0x38   :  { %4727 = vmatpush3.msra.mxu1 %v5570_v3  ;;  %4712 = vmatprep.subr.mxu0 %v5635_v30 }
  0x39   :  { %4728 = vmatprep.subr.mxu1 %v5572_v4  ;;  %4713 = vmatpush3.msra.mxu0 %v5635_v30  ;;  %v1428_v30 = vrot.slane %v5583_v12, 2  ;;  %v1432_v42 = vsel %vm1427_vm2, %v1429_v40, %v1431_v19 }
  0x3a   :  { %4679 = vmatprep.mubr.f32.mxu0 %v184_v13  ;;  %4714 = vmatprep.subr.mxu0 %v5671_v47  ;;  %v5789_v45 = vsel %vm77_vm1, %v1432_v42, 0 }
  0x3b   :  { %4729 = vmatpush3.msra.mxu1 %v5572_v4  ;;  %4715 = vmatpush3.msra.mxu0 %v5671_v47  ;;  %v1430_v26 = vsel %vm1427_vm2, %v1428_v30, %v1429_v40  ;;  %v5959_v40 = vsub.f32 %v46_v11, %v5924_v34  ;;  %v1440_v11 = vld [vmem:[#allocation2 + $0x90] sm:$0xff] }
  0x3c   :  { %4730 = vmatprep.subr.mxu1 %v5574_v5  ;;  %4680 = vmatmul.mubr.f32.gmra.mxu0 %v194_v15  ;;  %v5784_v44 = vsel %vm77_vm1, %v1430_v26, 0  ;;  %v915_v15 = vsub.f32 %v5874_v61, %v5910_v16 }
  0x3d   :  { %4716 = vmatprep.subr.mxu0 %v5674_v48  ;;  %4731 = vmatpush3.msra.mxu1 %v5574_v5 }
  0x3e   :  { %4717 = vmatpush3.msra.mxu0 %v5674_v48  ;;  %4732 = vmatprep.subr.mxu1 %v5576_v9 }
  0x3f   :  { %4718 = vmatprep.subr.mxu0 %v5677_v49  ;;  %4720 = vmatprep.mubr.f32.mxu0 %v5662_v43  ;;  %v5816_v43 = vand.u32 4294901760, %v53_v46 }
  0x40   :  { %4719 = vmatpush3.msra.mxu0 %v5677_v49  ;;  %4733 = vmatpush3.msra.mxu1 %v5576_v9 }
  0x41   :  { %4701 = vmatprep.mubr.f32.mxu1 %v5710_v2  ;;  %4721 = vmatmul.mubr.f32.vlgmr.msra.gmra.mxu0 %v5699_v58  ;;  %v49_v58 = vld [vmem:[#allocation2 + $0x18] sm:$0xff] }
  0x42   :  { %4734 = vmatprep.subr.mxu1 %v5578_v10  ;;  %4748 = vmatprep.subr.mxu0 %v5610_v22 }
  0x43   :  { %4702 = vmatmul.mubr.f32.gmra.mxu1 %v5726_v20  ;;  %4749 = vmatpush3.msra.mxu0 %v5610_v22  ;;  %v1433_v22 = vrot.slane %v5658_v41, 2 }
  0x44   :  { %4735 = vmatpush3.msra.mxu1 %v5578_v10  ;;  %4750 = vmatprep.subr.mxu0 %v5613_v23 }
  0x45   :  { %4736 = vmatprep.subr.mxu1 %v5601_v18  ;;  %4723 = vmatprep.mubr.f32.mxu0 %v5724_v21  ;;  %v1434_v47 = vsel %vm1427_vm2, %v1431_v19, %v1433_v22  ;;  %v1437_v48 = vsel %vm1427_vm2, %v1433_v22, %v1428_v30  ;;  %v916_v22 = vand.u32 4294901760, %v915_v15 }
  0x46   :  { %4737 = vmatpush3.msra.mxu1 %v5601_v18  ;;  %4751 = vmatpush3.msra.mxu0 %v5613_v23  ;;  %v5805_v23 = vsel %vm77_vm1, %v1434_v47, 0  ;;  %v5812_v49 = vsel %vm77_vm1, %v1437_v48, 0 }
  0x47   :  { %4738 = vmatprep.subr.mxu1 %v5615_v24  ;;  %4724 = vmatmul.mubr.f32.gmra.mxu0 %v5731_v33 }
  0x48   :  { %4752 = vmatprep.subr.mxu0 %v5618_v25  ;;  %4739 = vmatpush3.msra.mxu1 %v5615_v24 }
  0x49   :  { %4753 = vmatpush3.msra.mxu0 %v5618_v25  ;;  %4740 = vmatprep.subr.mxu1 %v5626_v27  ;;  %v52_v25 = vld [vmem:[#allocation2 + $0x30] sm:$0xff] }
  0x4a   :  { %4754 = vmatprep.subr.mxu0 %v5629_v28  ;;  %4741 = vmatpush3.msra.mxu1 %v5626_v27 }
  0x4b   :  { %4742 = vmatprep.mubr.f32.mxu1 %v162_v50  ;;  %4755 = vmatpush3.msra.mxu0 %v5629_v28  ;;  %v5822_v28 = vand.u32 4294901760, %v52_v25  ;;  %v51_v50 = vld [vmem:[#allocation2 + $0x28] sm:$0xff] }
  0x4c   :  { %4743 = vmatmul.mubr.f32.vlgmr.msra.gmra.mxu1 %v172_v1  ;;  %4756 = vmatprep.subr.mxu0 %v5649_v36 }
  0x4d   :  { %4770 = vmatprep.subr.mxu1 %v5570_v3  ;;  %4757 = vmatpush3.msra.mxu0 %v5649_v36  ;;  %v5830_v36 = vsub.f32 %v53_v46, %v5816_v43 }
  0x4e   :  { %4771 = vmatpush3.msra.mxu1 %v5570_v3  ;;  %4758 = vmatprep.subr.mxu0 %v5686_v54  ;;  %v5835_v3 = vand.u32 4294901760, %v51_v50 }
  0x4f   :  { %4772 = vmatprep.subr.mxu1 %v5572_v4  ;;  %4745 = vmatprep.mubr.f32.mxu1 %v182_v32  ;;  %v5853_v12 = vand.u32 4294901760, %v5830_v36 }
  0x50   :  { %4759 = vmatpush3.msra.mxu0 %v5686_v54  ;;  %4773 = vmatpush3.msra.mxu1 %v5572_v4  ;;  %v755_v54 = vsel %vm77_vm1, %v5598_v17, 0  ;;  %v5844_v4 = vsub.f32 %v52_v25, %v5822_v28  ;;  %v5855_v17 = vand.u32 4294901760, %v753_v53  ;;  %v5862_v59 = vsub.f32 %v51_v50, %v5835_v3 }
  0x51   :  { %4760 = vmatprep.subr.mxu0 %v5689_v55  ;;  %4746 = vmatmul.mubr.f32.gmra.mxu1 %v192_v37  ;;  %v894_v62 = vsub.f32 %v5830_v36, %v5853_v12  ;;  %v5978_v50 = vand.u32 4294901760, %v5959_v40 }
  0x52   :  { %4774 = vmatprep.subr.mxu1 %v5574_v5  ;;  %4761 = vmatpush3.msra.mxu0 %v5689_v55  ;;  %v48_v55 = vld [vmem:[#allocation2 + $0x10] sm:$0xff]  ;;  %v5869_v60 = vand.u32 4294901760, %v5844_v4  ;;  %v5883_v0 = vsub.f32 %v753_v53, %v5855_v17  ;;  %v5890_v1 = vand.u32 4294901760, %v5862_v59 }
  0x53   :  { %4775 = vmatpush3.msra.mxu1 %v5574_v5  ;;  %4762 = vmatprep.subr.mxu0 %v5692_v56  ;;  %v5857_v5 = vand.u32 4294901760, %v755_v54  ;;  %v5880_v63 = vand.u32 4294901760, %v48_v55  ;;  %v895_v29 = vand.u32 4294901760, %v894_v62 }
  0x54   :  { %4776 = vmatprep.subr.mxu1 %v5576_v9  ;;  %4763 = vmatpush3.msra.mxu0 %v5692_v56  ;;  %v5866_v56 = vand.u32 4294901760, %v49_v58  ;;  %v836_v31 = vand.u32 4294901760, %v5883_v0  ;;  %v908_v33 = vsub.f32 %v5862_v59, %v5890_v1 }
  0x55   :  { %4764 = vmatprep.mubr.f32.mxu0 %v5646_v35  ;;  %4777 = vmatpush3.msra.mxu1 %v5576_v9  ;;  %v47_v9 = vld [vmem:[#allocation2 + $0x8] sm:$0xff]  ;;  %v5893_v6 = vsub.f32 %v755_v54, %v5857_v5  ;;  %v5918_v32 = vsub.f32 %v48_v55, %v5880_v63  ;;  %v943_v55 = vsub.f32 %v5959_v40, %v5978_v50 }
  0x56   :  { %4765 = vmatmul.mubr.f32.vlgmr.msra.gmra.mxu0 %v5681_v51  ;;  %4778 = vmatprep.subr.mxu1 %v5578_v10  ;;  %v5902_v8 = vand.u32 4294901760, %v47_v9 }
  0x57   :  { %4792 = vmatprep.subr.mxu0 %v5816_v43  ;;  %4779 = vmatpush3.msra.mxu1 %v5578_v10  ;;  %v759_v10 = vsel %vm77_vm1, %v5658_v41, 0  ;;  %v901_v41 = vsub.f32 %v5844_v4, %v5869_v60  ;;  %v846_v37 = vand.u32 4294901760, %v5893_v6 }
  0x58   :  { %4793 = vmatpush3.msra.mxu0 %v5816_v43  ;;  %4780 = vmatprep.subr.mxu1 %v5601_v18  ;;  %v5912_v21 = vand.u32 4294901760, %v759_v10  ;;  %v5937_v13 = vsub.f32 %v47_v9, %v5902_v8 }
  0x59   :  { %4794 = vmatprep.subr.mxu0 %v5822_v28  ;;  %4767 = vmatprep.mubr.f32.mxu0 %v5710_v2  ;;  %v902_v38 = vand.u32 4294901760, %v901_v41  ;;  %v847_v19 = vsub.f32 %v5893_v6, %v846_v37 }
  0x5a   :  { %4781 = vmatpush3.msra.mxu1 %v5601_v18  ;;  %4795 = vmatpush3.msra.mxu0 %v5822_v28  ;;  %v5905_v18 = vsub.f32 %v49_v58, %v5866_v56  ;;  %v5965_v42 = vand.u32 4294901760, %v5937_v13 }
  0x5b   :  { %4782 = vmatprep.subr.mxu1 %v5615_v24  ;;  %4768 = vmatmul.mubr.f32.gmra.mxu0 %v5726_v20  ;;  %v848_v25 = vand.u32 4294901760, %v847_v19 }
  0x5c   :  { %4796 = vmatprep.subr.mxu0 %v5835_v3  ;;  %4783 = vmatpush3.msra.mxu1 %v5615_v24  ;;  %v5929_v24 = vsub.f32 %v5750_v14, %v5896_v7  ;;  %v5934_v39 = vand.u32 4294901760, %v5905_v18  ;;  %v5944_v14 = vsub.f32 %v759_v10, %v5912_v21  ;;  %v936_v53 = vsub.f32 %v5937_v13, %v5965_v42 }
  0x5d   :  { %4797 = vmatpush3.msra.mxu0 %v5835_v3  ;;  %4784 = vmatprep.subr.mxu1 %v5626_v27  ;;  %v944_v10 = vand.u32 4294901760, %v943_v55 }
  0x5e   :  { %4798 = vmatprep.subr.mxu0 %v5848_v57  ;;  %4785 = vmatpush3.msra.mxu1 %v5626_v27  ;;  %v837_v27 = vsub.f32 %v5883_v0, %v836_v31  ;;  %v856_v30 = vand.u32 4294901760, %v5929_v24  ;;  %v922_v26 = vsub.f32 %v5905_v18, %v5934_v39  ;;  %v866_v46 = vand.u32 4294901760, %v5944_v14 }
  0x5f   :  { %4786 = vmatprep.mubr.f32.mxu1 %v5646_v35  ;;  %4799 = vmatpush3.msra.mxu0 %v5848_v57  ;;  %v5951_v35 = vand.u32 4294901760, %v5918_v32  ;;  %v937_v9 = vand.u32 4294901760, %v936_v53 }
  0x60   :  { %4787 = vmatmul.mubr.f32.vlgmr.msra.gmra.mxu1 %v5681_v51  ;;  %4800 = vmatprep.subr.mxu0 %v5866_v56  ;;  %v909_v51 = vand.u32 4294901760, %v908_v33  ;;  %v838_v47 = vand.u32 4294901760, %v837_v27  ;;  %v923_v52 = vand.u32 4294901760, %v922_v26 }
  0x61   :  { %4814 = vmatprep.subr.mxu1 %v895_v29  ;;  %4801 = vmatpush3.msra.mxu0 %v5866_v56  ;;  %v929_v48 = vsub.f32 %v5918_v32, %v5951_v35 }
  0x62   :  { %4815 = vmatpush3.msra.mxu1 %v895_v29  ;;  %4802 = vmatprep.subr.mxu0 %v5880_v63 }
  0x63   :  { %4816 = vmatprep.subr.mxu1 %v902_v38  ;;  %4789 = vmatprep.mubr.f32.mxu1 %v5710_v2  ;;  %v857_v2 = vsub.f32 %v5929_v24, %v856_v30  ;;  %v930_v54 = vand.u32 4294901760, %v929_v48  ;;  %v6181_v48 = vand.u32 4294901760, %v5805_v23 }
  0x64   :  { %4803 = vmatpush3.msra.mxu0 %v5880_v63  ;;  %4817 = vmatpush3.msra.mxu1 %v902_v38 }
  0x65   :  { %4804 = vmatprep.subr.mxu0 %v5902_v8  ;;  %4790 = vmatmul.mubr.f32.gmra.mxu1 %v5726_v20  ;;  %v867_v20 = vsub.f32 %v5944_v14, %v866_v46  ;;  %v858_v58 = vand.u32 4294901760, %v857_v2  ;;  %v6186_v2 = vand.u32 4294901760, %v5812_v49 }
  0x66   :  { %4818 = vmatprep.subr.mxu1 %v909_v51  ;;  %4805 = vmatpush3.msra.mxu0 %v5902_v8 }
  0x67   :  { %4819 = vmatpush3.msra.mxu1 %v909_v51  ;;  %4806 = vmatprep.subr.mxu0 %v5924_v34  ;;  %v868_v62 = vand.u32 4294901760, %v867_v20 }
  0x68   :  { %4820 = vmatprep.subr.mxu1 %v916_v22  ;;  %4807 = vmatpush3.msra.mxu0 %v5924_v34 }
  0x69   :  { %4808 = vmatprep.mubr.f32.mxu0 %v838_v47  ;;  %4821 = vmatpush3.msra.mxu1 %v916_v22 }
  0x6a   :  { %4809 = vmatmul.mubr.f32.vlgmr.msra.gmra.mxu0 %v848_v25  ;;  %4822 = vmatprep.subr.mxu1 %v923_v52 }
  0x6b   :  { %4836 = vmatprep.subr.mxu0 %v5830_v36  ;;  %4823 = vmatpush3.msra.mxu1 %v923_v52 }
  0x6c   :  { %4837 = vmatpush3.msra.mxu0 %v5830_v36  ;;  %4824 = vmatprep.subr.mxu1 %v930_v54  ;;  %v1445_v36 = vld [vmem:[#allocation2 + $0xb8] sm:$0xff] }
  0x6d   :  { %4838 = vmatprep.subr.mxu0 %v5844_v4  ;;  %4811 = vmatprep.mubr.f32.mxu0 %v858_v58  ;;  %v6200_v58 = vsub.f32 %v5805_v23, %v6181_v48 }
  0x6e   :  { %4825 = vmatpush3.msra.mxu1 %v930_v54  ;;  %4839 = vmatpush3.msra.mxu0 %v5844_v4  ;;  %v1444_v4 = vld [vmem:[#allocation2 + $0xb0] sm:$0xff] }
  0x6f   :  { %4826 = vmatprep.subr.mxu1 %v937_v9  ;;  %4812 = vmatmul.mubr.f32.gmra.mxu0 %v868_v62  ;;  %v1550_v62 = vand.u32 4294901760, %v6200_v58 }
  0x70   :  { %4840 = vmatprep.subr.mxu0 %v5862_v59  ;;  %4827 = vmatpush3.msra.mxu1 %v937_v9 }
  0x71   :  { %4841 = vmatpush3.msra.mxu0 %v5862_v59  ;;  %4828 = vmatprep.subr.mxu1 %v944_v10  ;;  %v6050_v59 = vand.u32 4294901760, %v1444_v4 }
  0x72   :  { %4842 = vmatprep.subr.mxu0 %v5874_v61  ;;  %4829 = vmatpush3.msra.mxu1 %v944_v10 }
  0x73   :  { %4830 = vmatprep.mubr.f32.mxu1 %v5855_v17  ;;  %4843 = vmatpush3.msra.mxu0 %v5874_v61  ;;  %v1442_v61 = vld [vmem:[#allocation2 + $0xa0] sm:$0xff] }
  0x74   :  { %4831 = vmatmul.mubr.f32.vlgmr.msra.gmra.mxu1 %v5857_v5  ;;  %4844 = vmatprep.subr.mxu0 %v5905_v18 }
  0x75   :  { %4858 = vmatprep.subr.mxu1 %v5816_v43  ;;  %4845 = vmatpush3.msra.mxu0 %v5905_v18 }
  0x76   :  { %4859 = vmatpush3.msra.mxu1 %v5816_v43  ;;  %4846 = vmatprep.subr.mxu0 %v5918_v32 }
  0x77   :  { %4860 = vmatprep.subr.mxu1 %v5822_v28  ;;  %4833 = vmatprep.mubr.f32.mxu1 %v5896_v7 }
  0x78   :  { %4847 = vmatpush3.msra.mxu0 %v5918_v32  ;;  %4861 = vmatpush3.msra.mxu1 %v5822_v28 }
  0x79   :  { %4848 = vmatprep.subr.mxu0 %v5937_v13  ;;  %4834 = vmatmul.mubr.f32.gmra.mxu1 %v5912_v21 }
  0x7a   :  { %4862 = vmatprep.subr.mxu1 %v5835_v3  ;;  %4849 = vmatpush3.msra.mxu0 %v5937_v13 }
  0x7b   :  { %4863 = vmatpush3.msra.mxu1 %v5835_v3  ;;  %4850 = vmatprep.subr.mxu0 %v5959_v40 }
  0x7c   :  { %4864 = vmatprep.subr.mxu1 %v5848_v57  ;;  %4851 = vmatpush3.msra.mxu0 %v5959_v40 }
  0x7d   :  { %4852 = vmatprep.mubr.f32.mxu0 %v5883_v0  ;;  %4865 = vmatpush3.msra.mxu1 %v5848_v57 }
  0x7e   :  { %4853 = vmatmul.mubr.f32.vlgmr.msra.gmra.mxu0 %v5893_v6  ;;  %4866 = vmatprep.subr.mxu1 %v5866_v56  ;;  %v6072_v6 = vand.u32 4294901760, %v1442_v61 }
  0x7f   :  { %4880 = vmatprep.subr.mxu0 %v5853_v12  ;;  %4867 = vmatpush3.msra.mxu1 %v5866_v56 }
  0x80   :  { %4881 = vmatpush3.msra.mxu0 %v5853_v12  ;;  %4868 = vmatprep.subr.mxu1 %v5880_v63  ;;  %v6044_v12 = vand.u32 4294901760, %v1445_v36  ;;  %v6100_v32 = vsub.f32 %v1442_v61, %v6072_v6 }
  0x81   :  { %4882 = vmatprep.subr.mxu0 %v5869_v60  ;;  %4855 = vmatprep.mubr.f32.mxu0 %v5929_v24  ;;  %v1438_v24 = vld [vmem:[#allocation2 + $0x80] sm:$0xff] }
  0x82   :  { %4869 = vmatpush3.msra.mxu1 %v5880_v63  ;;  %4883 = vmatpush3.msra.mxu0 %v5869_v60  ;;  %v1443_v60 = vld [vmem:[#allocation2 + $0xa8] sm:$0xff]  ;;  %v6058_v0 = vsub.f32 %v1445_v36, %v6044_v12  ;;  %v6137_v27 = vand.u32 4294901760, %v1438_v24  ;;  %v1551_v36 = vsub.f32 %v6200_v58, %v1550_v62 }
  0x83   :  { %4870 = vmatprep.subr.mxu1 %v5902_v8  ;;  %4856 = vmatmul.mubr.f32.gmra.mxu0 %v5944_v14 }
  0x84   :  { %4884 = vmatprep.subr.mxu0 %v5890_v1  ;;  %4871 = vmatpush3.msra.mxu1 %v5902_v8  ;;  %v6077_v41 = vand.u32 4294901760, %v6058_v0 }
  0x85   :  { %4885 = vmatpush3.msra.mxu0 %v5890_v1  ;;  %4872 = vmatprep.subr.mxu1 %v5924_v34  ;;  %v1441_v1 = vld [vmem:[#allocation2 + $0x98] sm:$0xff] }
  0x86   :  { %4886 = vmatprep.subr.mxu0 %v5910_v16  ;;  %4873 = vmatpush3.msra.mxu1 %v5924_v34  ;;  %v1588_v33 = vsub.f32 %v6058_v0, %v6077_v41 }
  0x87   :  { %4874 = vmatprep.mubr.f32.mxu1 %v836_v31  ;;  %4887 = vmatpush3.msra.mxu0 %v5910_v16  ;;  %v6087_v16 = vand.u32 4294901760, %v5784_v44  ;;  %v1439_v31 = vld [vmem:[#allocation2 + $0x88] sm:$0xff] }
  0x88   :  { %4875 = vmatmul.mubr.f32.vlgmr.msra.gmra.mxu1 %v846_v37  ;;  %4888 = vmatprep.subr.mxu0 %v5934_v39  ;;  %v6106_v37 = vand.u32 4294901760, %v1440_v11  ;;  %v6124_v15 = vand.u32 4294901760, %v1439_v31  ;;  %v1589_v14 = vand.u32 4294901760, %v1588_v33 }
  0x89   :  { %4902 = vmatprep.subr.mxu1 %v5816_v43  ;;  %4889 = vmatpush3.msra.mxu0 %v5934_v39  ;;  %v6115_v38 = vsub.f32 %v5784_v44, %v6087_v16  ;;  %v6133_v44 = vand.u32 4294901760, %v6100_v32 }
  0x8a   :  { %4903 = vmatpush3.msra.mxu1 %v5816_v43  ;;  %4890 = vmatprep.subr.mxu0 %v5951_v35  ;;  %v6063_v43 = vand.u32 4294901760, %v1443_v60  ;;  %v6154_v40 = vsub.f32 %v1439_v31, %v6124_v15 }
  0x8b   :  { %4904 = vmatprep.subr.mxu1 %v5822_v28  ;;  %4877 = vmatprep.mubr.f32.mxu1 %v856_v30  ;;  %v1530_v51 = vand.u32 4294901760, %v6115_v38  ;;  %v1609_v26 = vsub.f32 %v6100_v32, %v6133_v44 }
  0x8c   :  { %4891 = vmatpush3.msra.mxu0 %v5951_v35  ;;  %4905 = vmatpush3.msra.mxu1 %v5822_v28  ;;  %v6068_v28 = vsub.f32 %v1444_v4, %v6050_v59  ;;  %v6084_v18 = vsub.f32 %v1443_v60, %v6063_v43  ;;  %v6140_v35 = vsub.f32 %v1440_v11, %v6106_v37  ;;  %v6178_v47 = vand.u32 4294901760, %v6154_v40 }
  0x8d   :  { %4892 = vmatprep.subr.mxu0 %v5965_v42  ;;  %4878 = vmatmul.mubr.f32.gmra.mxu1 %v866_v46  ;;  %v1610_v25 = vand.u32 4294901760, %v1609_v26  ;;  %v1552_v60 = vand.u32 4294901760, %v1551_v36 }
  0x8e   :  { %4906 = vmatprep.subr.mxu1 %v5835_v3  ;;  %4893 = vmatpush3.msra.mxu0 %v5965_v42  ;;  %v6092_v29 = vand.u32 4294901760, %v6068_v28  ;;  %v1630_v54 = vsub.f32 %v6154_v40, %v6178_v47 }
  0x8f   :  { %4907 = vmatpush3.msra.mxu1 %v5835_v3  ;;  %4894 = vmatprep.subr.mxu0 %v5978_v50  ;;  %v6081_v3 = vand.u32 4294901760, %v1441_v1 }
  0x90   :  { %4908 = vmatprep.subr.mxu1 %v5848_v57  ;;  %4895 = vmatpush3.msra.mxu0 %v5978_v50  ;;  %v1595_v13 = vsub.f32 %v6068_v28, %v6092_v29  ;;  %v1631_v23 = vand.u32 4294901760, %v1630_v54  ;;  %v2177_v54 = vld [vmem:[#allocation2 + $0xd0] sm:$0xff] }
  0x91   :  { %4896 = vmatprep.mubr.f32.mxu0 %v5855_v17  ;;  %4909 = vmatpush3.msra.mxu1 %v5848_v57  ;;  %v6095_v57 = vand.u32 4294901760, %v5789_v45  ;;  %v6118_v39 = vsub.f32 %v1441_v1, %v6081_v3 }
  0x92   :  { %4897 = vmatmul.mubr.f32.vlgmr.msra.gmra.mxu0 %v5857_v5  ;;  %4910 = vmatprep.subr.mxu1 %v5866_v56 }
  0x93   :  { %4924 = vmatprep.subr.mxu0 %v6044_v12  ;;  %4911 = vmatpush3.msra.mxu1 %v5866_v56  ;;  %v6111_v56 = vand.u32 4294901760, %v6084_v18  ;;  %v6148_v19 = vand.u32 4294901760, %v6118_v39 }
  0x94   :  { %4925 = vmatpush3.msra.mxu0 %v6044_v12  ;;  %4912 = vmatprep.subr.mxu1 %v5880_v63 }
  0x95   :  { %4926 = vmatprep.subr.mxu0 %v6050_v59  ;;  %4899 = vmatprep.mubr.f32.mxu0 %v5896_v7  ;;  %v1616_v22 = vsub.f32 %v6118_v39, %v6148_v19 }
  0x96   :  { %4913 = vmatpush3.msra.mxu1 %v5880_v63  ;;  %4927 = vmatpush3.msra.mxu0 %v6050_v59  ;;  %v6128_v63 = vsub.f32 %v5789_v45, %v6095_v57  ;;  %v1602_v45 = vsub.f32 %v6084_v18, %v6111_v56 }
  0x97   :  { %4914 = vmatprep.subr.mxu1 %v5902_v8  ;;  %4900 = vmatmul.mubr.f32.gmra.mxu0 %v5912_v21 }
  0x98   :  { %4928 = vmatprep.subr.mxu0 %v6063_v43  ;;  %4915 = vmatpush3.msra.mxu1 %v5902_v8  ;;  %v1596_v8 = vand.u32 4294901760, %v1595_v13  ;;  %v1540_v30 = vand.u32 4294901760, %v6128_v63  ;;  %v1603_v42 = vand.u32 4294901760, %v1602_v45  ;;  %v2182_v13 = vld [vmem:[#allocation2 + $0xf8] sm:$0xff] }
  0x99   :  { %4929 = vmatpush3.msra.mxu0 %v6063_v43  ;;  %4916 = vmatprep.subr.mxu1 %v5924_v34 }
  0x9a   :  { %4930 = vmatprep.subr.mxu0 %v6072_v6  ;;  %4917 = vmatpush3.msra.mxu1 %v5924_v34  ;;  %v6162_v34 = vand.u32 4294901760, %v6140_v35  ;;  %v1541_v46 = vsub.f32 %v6128_v63, %v1540_v30 }
  0x9b   :  { %4918 = vmatprep.mubr.f32.mxu1 %v5855_v17  ;;  %4931 = vmatpush3.msra.mxu0 %v6072_v6  ;;  %v6165_v17 = vsub.f32 %v1438_v24, %v6137_v27 }
  0x9c   :  { %4919 = vmatmul.mubr.f32.vlgmr.msra.gmra.mxu1 %v5857_v5  ;;  %4932 = vmatprep.subr.mxu0 %v6081_v3  ;;  %v1531_v5 = vsub.f32 %v6115_v38, %v1530_v51  ;;  %v1623_v50 = vsub.f32 %v6140_v35, %v6162_v34  ;;  %v1542_v20 = vand.u32 4294901760, %v1541_v46 }
  0x9d   :  { %4946 = vmatprep.subr.mxu1 %v1589_v14  ;;  %4933 = vmatpush3.msra.mxu0 %v6081_v3  ;;  %v6192_v52 = vand.u32 4294901760, %v6165_v17 }
  0x9e   :  { %4947 = vmatpush3.msra.mxu1 %v1589_v14  ;;  %4934 = vmatprep.subr.mxu0 %v6106_v37  ;;  %v1532_v53 = vand.u32 4294901760, %v1531_v5  ;;  %v1624_v55 = vand.u32 4294901760, %v1623_v50 }
  0x9f   :  { %4948 = vmatprep.subr.mxu1 %v1596_v8  ;;  %4921 = vmatprep.mubr.f32.mxu1 %v5896_v7  ;;  %v1617_v7 = vand.u32 4294901760, %v1616_v22  ;;  %v1637_v9 = vsub.f32 %v6165_v17, %v6192_v52 }
  0xa0   :  { %4935 = vmatpush3.msra.mxu0 %v6106_v37  ;;  %4949 = vmatpush3.msra.mxu1 %v1596_v8  ;;  %v2180_v8 = vld [vmem:[#allocation2 + $0xe8] sm:$0xff] }
  0xa1   :  { %4936 = vmatprep.subr.mxu0 %v6124_v15  ;;  %4922 = vmatmul.mubr.f32.gmra.mxu1 %v5912_v21  ;;  %v6205_v21 = vsub.f32 %v5812_v49, %v6186_v2  ;;  %v1638_v10 = vand.u32 4294901760, %v1637_v9 }
  0xa2   :  { %4950 = vmatprep.subr.mxu1 %v1603_v42  ;;  %4937 = vmatpush3.msra.mxu0 %v6124_v15 }
  0xa3   :  { %4951 = vmatpush3.msra.mxu1 %v1603_v42  ;;  %4938 = vmatprep.subr.mxu0 %v6137_v27  ;;  %v1560_v49 = vand.u32 4294901760, %v6205_v21  ;;  %v2179_v42 = vld [vmem:[#allocation2 + $0xe0] sm:$0xff] }
  0xa4   :  { %4952 = vmatprep.subr.mxu1 %v1610_v25  ;;  %4939 = vmatpush3.msra.mxu0 %v6137_v27 }
  0xa5   :  { %4953 = vmatpush3.msra.mxu1 %v1610_v25  ;;  %4940 = vmatprep.mubr.f32.mxu0 %v1532_v53  ;;  %v1561_v4 = vsub.f32 %v6205_v21, %v1560_v49 }
  0xa6   :  { %4954 = vmatprep.subr.mxu1 %v1617_v7  ;;  %4968 = vmatprep.subr.mxu0 %v6058_v0 }
  0xa7   :  { %4941 = vmatmul.mubr.f32.vlgmr.msra.gmra.mxu0 %v1542_v20  ;;  %4955 = vmatpush3.msra.mxu1 %v1617_v7  ;;  %v1562_v61 = vand.u32 4294901760, %v1561_v4 }
  0xa8   :  { %4969 = vmatpush3.msra.mxu0 %v6058_v0  ;;  %4956 = vmatprep.subr.mxu1 %v1624_v55  ;;  %v2186_v0 = vld [vmem:[#allocation2 + $0x118] sm:$0xff] }
  0xa9   :  { %4970 = vmatprep.subr.mxu0 %v6068_v28  ;;  %4957 = vmatpush3.msra.mxu1 %v1624_v55  ;;  %v6311_v1 = vand.u32 4294901760, %v2186_v0 }
  0xaa   :  { %4971 = vmatpush3.msra.mxu0 %v6068_v28  ;;  %4958 = vmatprep.subr.mxu1 %v1631_v23  ;;  %v2185_v28 = vld [vmem:[#allocation2 + $0x110] sm:$0xff] }
  0xab   :  { %4972 = vmatprep.subr.mxu0 %v6084_v18  ;;  %4959 = vmatpush3.msra.mxu1 %v1631_v23  ;;  %7116 = vst [vmem:[#allocation10_spill] sm:$0xff] %v6311_v1  ;;  %v6418_v23 = vand.u32 4294901760, %v2177_v54 }
  0xac   :  { %4973 = vmatpush3.msra.mxu0 %v6084_v18  ;;  %4960 = vmatprep.subr.mxu1 %v1638_v10 }
  0xad   :  { %4974 = vmatprep.subr.mxu0 %v6100_v32  ;;  %4961 = vmatpush3.msra.mxu1 %v1638_v10  ;;  %7143 = vst [vmem:[#allocation37_spill] sm:$0xff] %v6418_v23 }
  0xae   :  { %4962 = vmatprep.mubr.f32.mxu1 %v6087_v16  ;;  %4975 = vmatpush3.msra.mxu0 %v6100_v32 }
  0xaf   :  { %4963 = vmatmul.mubr.f32.vlgmr.msra.gmra.mxu1 %v6095_v57  ;;  %4976 = vmatprep.subr.mxu0 %v6118_v39 }
  0xb0   :  { %4990 = vmatprep.subr.mxu1 %v6044_v12  ;;  %4977 = vmatpush3.msra.mxu0 %v6118_v39 }
  0xb1   :  { %4991 = vmatpush3.msra.mxu1 %v6044_v12  ;;  %4978 = vmatprep.subr.mxu0 %v6140_v35 }
  0xb2   :  { %4992 = vmatprep.subr.mxu1 %v6050_v59  ;;  %4943 = vmatprep.mubr.f32.mxu0 %v1552_v60  ;;  %v6432_v60 = vsub.f32 %v2177_v54, %v6418_v23 }
  0xb3   :  { %4979 = vmatpush3.msra.mxu0 %v6140_v35  ;;  %4993 = vmatpush3.msra.mxu1 %v6050_v59 }
  0xb4   :  { %4944 = vmatmul.mubr.f32.gmra.mxu0 %v1562_v61  ;;  %4980 = vmatprep.subr.mxu0 %v6154_v40  ;;  %7145 = vst [vmem:[#allocation39_spill] sm:$0xff] %v6432_v60 }
  0xb5   :  { %4994 = vmatprep.subr.mxu1 %v6063_v43  ;;  %4981 = vmatpush3.msra.mxu0 %v6154_v40 }
  0xb6   :  { %4995 = vmatpush3.msra.mxu1 %v6063_v43  ;;  %4982 = vmatprep.subr.mxu0 %v6165_v17 }
  0xb7   :  { %4996 = vmatprep.subr.mxu1 %v6072_v6  ;;  %4983 = vmatpush3.msra.mxu0 %v6165_v17  ;;  %v6382_v17 = vand.u32 4294901760, %v2180_v8 }
  0xb8   :  { %4984 = vmatprep.mubr.f32.mxu0 %v6115_v38  ;;  %4997 = vmatpush3.msra.mxu1 %v6072_v6 }
  0xb9   :  { %4965 = vmatprep.mubr.f32.mxu1 %v6181_v48  ;;  %4985 = vmatmul.mubr.f32.vlgmr.msra.gmra.mxu0 %v6128_v63  ;;  %7134 = vst [vmem:[#allocation28_spill] sm:$0xff] %v6382_v17  ;;  %v6395_v25 = vsub.f32 %v2180_v8, %v6382_v17 }
  0xba   :  { %4998 = vmatprep.subr.mxu1 %v6081_v3  ;;  %5012 = vmatprep.subr.mxu0 %v6077_v41 }
  0xbb   :  { %4966 = vmatmul.mubr.f32.gmra.mxu1 %v6186_v2  ;;  %5013 = vmatpush3.msra.mxu0 %v6077_v41  ;;  %v6319_v41 = vsub.f32 %v2186_v0, %v6311_v1  ;;  %7137 = vst [vmem:[#allocation31_spill] sm:$0xff] %v6395_v25  ;;  %v6407_v20 = vand.u32 4294901760, %v6395_v25 }
  0xbc   :  { %4999 = vmatpush3.msra.mxu1 %v6081_v3  ;;  %5014 = vmatprep.subr.mxu0 %v6092_v29 }
  0xbd   :  { %5000 = vmatprep.subr.mxu1 %v6106_v37  ;;  %4987 = vmatprep.mubr.f32.mxu0 %v6200_v58  ;;  %7118 = vst [vmem:[#allocation12_spill] sm:$0xff] %v6319_v41  ;;  %v6328_v18 = vand.u32 4294901760, %v6319_v41  ;;  %7140 = vst [vmem:[#allocation34_spill] sm:$0xff] %v6407_v20 }
  0xbe   :  { %5001 = vmatpush3.msra.mxu1 %v6106_v37  ;;  %5015 = vmatpush3.msra.mxu0 %v6092_v29  ;;  %v2184_v29 = vld [vmem:[#allocation2 + $0x108] sm:$0xff] }
  0xbf   :  { %5002 = vmatprep.subr.mxu1 %v6124_v15  ;;  %4988 = vmatmul.mubr.f32.gmra.mxu0 %v6205_v21  ;;  %7120 = vst [vmem:[#allocation14_spill] sm:$0xff] %v6328_v18  ;;  %v2342_v32 = vsub.f32 %v6319_v41, %v6328_v18 }
  0xc0   :  { %5016 = vmatprep.subr.mxu0 %v6111_v56  ;;  %5003 = vmatpush3.msra.mxu1 %v6124_v15 }
  0xc1   :  { %5017 = vmatpush3.msra.mxu0 %v6111_v56  ;;  %5004 = vmatprep.subr.mxu1 %v6137_v27  ;;  %v2343_v38 = vand.u32 4294901760, %v2342_v32 }
  0xc2   :  { %5018 = vmatprep.subr.mxu0 %v6133_v44  ;;  %5005 = vmatpush3.msra.mxu1 %v6137_v27 }
  0xc3   :  { %5006 = vmatprep.mubr.f32.mxu1 %v1530_v51  ;;  %5019 = vmatpush3.msra.mxu0 %v6133_v44  ;;  %v6357_v44 = vand.u32 4294901760, %v2182_v13 }
  0xc4   :  { %5007 = vmatmul.mubr.f32.vlgmr.msra.gmra.mxu1 %v1540_v30  ;;  %5020 = vmatprep.subr.mxu0 %v6148_v19 }
  0xc5   :  { %5034 = vmatprep.subr.mxu1 %v6044_v12  ;;  %5021 = vmatpush3.msra.mxu0 %v6148_v19  ;;  %7128 = vst [vmem:[#allocation22_spill] sm:$0xff] %v6357_v44  ;;  %v6367_v51 = vsub.f32 %v2182_v13, %v6357_v44 }
  0xc6   :  { %5035 = vmatpush3.msra.mxu1 %v6044_v12  ;;  %5022 = vmatprep.subr.mxu0 %v6162_v34  ;;  %v2187_v12 = vld [vmem:[#allocation2 + $0x120] sm:$0xff] }
  0xc7   :  { %5036 = vmatprep.subr.mxu1 %v6050_v59  ;;  %5009 = vmatprep.mubr.f32.mxu1 %v1550_v62  ;;  %7130 = vst [vmem:[#allocation24_spill] sm:$0xff] %v6367_v51  ;;  %v6376_v26 = vand.u32 4294901760, %v6367_v51  ;;  %v2384_v62 = vsub.f32 %v6395_v25, %v6407_v20 }
  0xc8   :  { %5023 = vmatpush3.msra.mxu0 %v6162_v34  ;;  %5037 = vmatpush3.msra.mxu1 %v6050_v59  ;;  %v6306_v59 = vand.u32 4294901760, %v2187_v12 }
  0xc9   :  { %5024 = vmatprep.subr.mxu0 %v6178_v47  ;;  %5010 = vmatmul.mubr.f32.gmra.mxu1 %v1560_v49  ;;  %7132 = vst [vmem:[#allocation26_spill] sm:$0xff] %v6376_v26  ;;  %v2370_v46 = vsub.f32 %v6367_v51, %v6376_v26  ;;  %v2176_v49 = vld [vmem:[#allocation2 + $0xc8] sm:$0xff] }
  0xca   :  { %5038 = vmatprep.subr.mxu1 %v6063_v43  ;;  %5025 = vmatpush3.msra.mxu0 %v6178_v47  ;;  %7114 = vst [vmem:[#allocation8_spill] sm:$0xff] %v6306_v59  ;;  %v6434_v61 = vand.u32 4294901760, %v2176_v49 }
  0xcb   :  { %5039 = vmatpush3.msra.mxu1 %v6063_v43  ;;  %5026 = vmatprep.subr.mxu0 %v6192_v52  ;;  %v6309_v43 = vsub.f32 %v2187_v12, %v6306_v59  ;;  %v2371_v50 = vand.u32 4294901760, %v2370_v46  ;;  %v2385_v12 = vand.u32 4294901760, %v2384_v62 }
  0xcc   :  { %5040 = vmatprep.subr.mxu1 %v6072_v6  ;;  %5027 = vmatpush3.msra.mxu0 %v6192_v52  ;;  %7146 = vst [vmem:[#allocation40_spill] sm:$0xff] %v6434_v61 }
  0xcd   :  { %5028 = vmatprep.mubr.f32.mxu0 %v6087_v16  ;;  %5041 = vmatpush3.msra.mxu1 %v6072_v6  ;;  %7115 = vst [vmem:[#allocation9_spill] sm:$0xff] %v6309_v43  ;;  %v6316_v6 = vand.u32 4294901760, %v6309_v43 }
  0xce   :  { %5029 = vmatmul.mubr.f32.vlgmr.msra.gmra.mxu0 %v6095_v57  ;;  %5042 = vmatprep.subr.mxu1 %v6081_v3 }
  0xcf   :  { %5031 = vmatprep.mubr.f32.mxu0 %v6181_v48  ;;  %5043 = vmatpush3.msra.mxu1 %v6081_v3  ;;  %7117 = vst [vmem:[#allocation11_spill] sm:$0xff] %v6316_v6  ;;  %v6321_v3 = vand.u32 4294901760, %v2185_v28  ;;  %v2335_v11 = vsub.f32 %v6309_v43, %v6316_v6 }
  0xd0   :  { %5050 = vmatprep.mubr.f32.mxu1 %v6087_v16  ;;  %5044 = vmatprep.subr.mxu1 %v6106_v37 }
  0xd1   :  { %5045 = vmatpush3.msra.mxu1 %v6106_v37  ;;  %5056 = vmatprep.subr.mxu0 %v6306_v59  ;;  %7119 = vst [vmem:[#allocation13_spill] sm:$0xff] %v6321_v3  ;;  %v6331_v16 = vsub.f32 %v2185_v28, %v6321_v3  ;;  %v2336_v31 = vand.u32 4294901760, %v2335_v11  ;;  %v2183_v37 = vld [vmem:[#allocation2 + $0x100] sm:$0xff]  ;;  %v6441_v11 = vand.u32 4294901760, %v6432_v60 }
  0xd2   :  { %5032 = vmatmul.mubr.f32.gmra.mxu0 %v6186_v2  ;;  %5046 = vmatprep.subr.mxu1 %v6124_v15  ;;  %v6345_v24 = vand.u32 4294901760, %v2183_v37 }
  0xd3   :  { %5047 = vmatpush3.msra.mxu1 %v6124_v15  ;;  %5057 = vmatpush3.msra.mxu0 %v6306_v59  ;;  %7121 = vst [vmem:[#allocation15_spill] sm:$0xff] %v6331_v16  ;;  %v6340_v33 = vand.u32 4294901760, %v6331_v16  ;;  %7147 = vst [vmem:[#allocation41_spill] sm:$0xff] %v6441_v11 }
  0xd4   :  { %5048 = vmatprep.subr.mxu1 %v6137_v27  ;;  %5058 = vmatprep.subr.mxu0 %v6311_v1  ;;  %7125 = vst [vmem:[#allocation19_spill] sm:$0xff] %v6345_v24  ;;  %v6355_v63 = vsub.f32 %v2183_v37, %v6345_v24  ;;  %v2405_v37 = vsub.f32 %v6432_v60, %v6441_v11 }
  0xd5   :  { %5049 = vmatpush3.msra.mxu1 %v6137_v27  ;;  %5059 = vmatpush3.msra.mxu0 %v6311_v1  ;;  %7123 = vst [vmem:[#allocation17_spill] sm:$0xff] %v6340_v33  ;;  %v2349_v39 = vsub.f32 %v6331_v16, %v6340_v33  ;;  %v2181_v27 = vld [vmem:[#allocation2 + $0xf0] sm:$0xff] }
  0xd6   :  { %5051 = vmatmul.mubr.f32.vlgmr.msra.gmra.mxu1 %v6095_v57  ;;  %5060 = vmatprep.subr.mxu0 %v6321_v3  ;;  %v6334_v57 = vand.u32 4294901760, %v2184_v29  ;;  %7127 = vst [vmem:[#allocation21_spill] sm:$0xff] %v6355_v63  ;;  %v6364_v45 = vand.u32 4294901760, %v6355_v63  ;;  %v6369_v19 = vand.u32 4294901760, %v2181_v27 }
  0xd7   :  { %5053 = vmatprep.mubr.f32.mxu1 %v6181_v48  ;;  %5061 = vmatpush3.msra.mxu0 %v6321_v3  ;;  %v2350_v14 = vand.u32 4294901760, %v2349_v39  ;;  %v6392_v48 = vand.u32 4294901760, %v2179_v42  ;;  %v2406_v39 = vand.u32 4294901760, %v2405_v37 }
  0xd8   :  { %7122 = vst [vmem:[#allocation16_spill] sm:$0xff] %v6334_v57  ;;  %v6343_v56 = vsub.f32 %v2184_v29, %v6334_v57  ;;  %5062 = vmatprep.subr.mxu0 %v6334_v57  ;;  %5086 = vmatprep.subr.mxu1 %v2336_v31  ;;  %7129 = vst [vmem:[#allocation23_spill] sm:$0xff] %v6364_v45  ;;  %v2363_v40 = vsub.f32 %v6355_v63, %v6364_v45 }
  0xd9   :  { %5063 = vmatpush3.msra.mxu0 %v6334_v57  ;;  %5087 = vmatpush3.msra.mxu1 %v2336_v31  ;;  %7131 = vst [vmem:[#allocation25_spill] sm:$0xff] %v6369_v19  ;;  %v6379_v34 = vsub.f32 %v2181_v27, %v6369_v19  ;;  %7136 = vst [vmem:[#allocation30_spill] sm:$0xff] %v6392_v48  ;;  %v6401_v53 = vsub.f32 %v2179_v42, %v6392_v48 }
  0xda   :  { %5054 = vmatmul.mubr.f32.gmra.mxu1 %v6186_v2  ;;  %7124 = vst [vmem:[#allocation18_spill] sm:$0xff] %v6343_v56  ;;  %v6352_v15 = vand.u32 4294901760, %v6343_v56  ;;  %5064 = vmatprep.subr.mxu0 %v6345_v24  ;;  %v2364_v22 = vand.u32 4294901760, %v2363_v40  ;;  %v2178_v2 = vld [vmem:[#allocation2 + $0xd8] sm:$0xff]  ;;  %v6444_v29 = vsub.f32 %v2176_v49, %v6434_v61 }
  0xdb   :  { %5088 = vmatprep.subr.mxu1 %v2343_v38  ;;  %5065 = vmatpush3.msra.mxu0 %v6345_v24  ;;  %7133 = vst [vmem:[#allocation27_spill] sm:$0xff] %v6379_v34  ;;  %v6390_v47 = vand.u32 4294901760, %v6379_v34  ;;  %7138 = vst [vmem:[#allocation32_spill] sm:$0xff] %v6401_v53  ;;  %v6403_v7 = vand.u32 4294901760, %v2178_v2  ;;  %v6413_v55 = vand.u32 4294901760, %v6401_v53 }
  0xdc   :  { %7126 = vst [vmem:[#allocation20_spill] sm:$0xff] %v6352_v15  ;;  %5089 = vmatpush3.msra.mxu1 %v2343_v38  ;;  %v2356_v35 = vsub.f32 %v6343_v56, %v6352_v15  ;;  %5066 = vmatprep.subr.mxu0 %v6357_v44  ;;  %7148 = vst [vmem:[#allocation42_spill] sm:$0xff] %v6444_v29  ;;  %v6453_v38 = vand.u32 4294901760, %v6444_v29 }
  0xdd   :  { %5090 = vmatprep.subr.mxu1 %v2350_v14  ;;  %5067 = vmatpush3.msra.mxu0 %v6357_v44  ;;  %7135 = vst [vmem:[#allocation29_spill] sm:$0xff] %v6390_v47  ;;  %v2377_v52 = vsub.f32 %v6379_v34, %v6390_v47  ;;  %7139 = vst [vmem:[#allocation33_spill] sm:$0xff] %v6403_v7  ;;  %v6416_v9 = vsub.f32 %v2178_v2, %v6403_v7 }
  0xde   :  { %5091 = vmatpush3.msra.mxu1 %v2350_v14  ;;  %v2357_v30 = vand.u32 4294901760, %v2356_v35  ;;  %5068 = vmatprep.subr.mxu0 %v6369_v19  ;;  %7141 = vst [vmem:[#allocation35_spill] sm:$0xff] %v6413_v55  ;;  %v2391_v36 = vsub.f32 %v6401_v53, %v6413_v55  ;;  %7149 = vst [vmem:[#allocation43_spill] sm:$0xff] %v6453_v38  ;;  %v2412_v13 = vsub.f32 %v6444_v29, %v6453_v38 }
  0xdf   :  { %5069 = vmatpush3.msra.mxu0 %v6369_v19  ;;  %v2378_v21 = vand.u32 4294901760, %v2377_v52  ;;  %7142 = vst [vmem:[#allocation36_spill] sm:$0xff] %v6416_v9  ;;  %v6429_v4 = vand.u32 4294901760, %v6416_v9 }
  0xe0   :  { %5092 = vmatprep.subr.mxu1 %v2357_v30  ;;  %5070 = vmatprep.subr.mxu0 %v6382_v17  ;;  %v2392_v0 = vand.u32 4294901760, %v2391_v36  ;;  %v2413_v35 = vand.u32 4294901760, %v2412_v13 }
  0xe1   :  { %5093 = vmatpush3.msra.mxu1 %v2357_v30  ;;  %5071 = vmatpush3.msra.mxu0 %v6382_v17  ;;  %7144 = vst [vmem:[#allocation38_spill] sm:$0xff] %v6429_v4  ;;  %v2398_v28 = vsub.f32 %v6416_v9, %v6429_v4 }
  0xe2   :  { %5094 = vmatprep.subr.mxu1 %v2364_v22  ;;  %5072 = vmatprep.subr.mxu0 %v6392_v48 }
  0xe3   :  { %5095 = vmatpush3.msra.mxu1 %v2364_v22  ;;  %5073 = vmatpush3.msra.mxu0 %v6392_v48  ;;  %v2399_v32 = vand.u32 4294901760, %v2398_v28 }
  0xe4   :  { %5096 = vmatprep.subr.mxu1 %v2371_v50  ;;  %5074 = vmatprep.subr.mxu0 %v6403_v7 }
  0xe5   :  { %5097 = vmatpush3.msra.mxu1 %v2371_v50  ;;  %5075 = vmatpush3.msra.mxu0 %v6403_v7 }
  0xe6   :  { %5098 = vmatprep.subr.mxu1 %v2378_v21  ;;  %5076 = vmatprep.subr.mxu0 %v6418_v23 }
  0xe7   :  { %5099 = vmatpush3.msra.mxu1 %v2378_v21  ;;  %5077 = vmatpush3.msra.mxu0 %v6418_v23 }
  0xe8   :  { %5100 = vmatprep.subr.mxu1 %v2385_v12  ;;  %5078 = vmatprep.subr.mxu0 %v6434_v61 }
  0xe9   :  { %5101 = vmatpush3.msra.mxu1 %v2385_v12  ;;  %5079 = vmatpush3.msra.mxu0 %v6434_v61 }
  0xea   :  { %5102 = vmatprep.subr.mxu1 %v2392_v0  ;;  %5116 = vmatprep.subr.mxu0 %v6309_v43 }
  0xeb   :  { %5103 = vmatpush3.msra.mxu1 %v2392_v0 }
  0xec   :  { %5104 = vmatprep.subr.mxu1 %v2399_v32 }
  0xed   :  { %5105 = vmatpush3.msra.mxu1 %v2399_v32 }
  0xee   :  { %5106 = vmatprep.subr.mxu1 %v2406_v39 }
  0xef   :  { %5107 = vmatpush3.msra.mxu1 %v2406_v39 }
  0xf0   :  { %v6385_v5 = vpop.f32.mrf.mxu0  ;;  %5108 = vmatprep.subr.mxu1 %v2413_v35 }
  0xf1   :  { %5109 = vmatpush3.msra.mxu1 %v2413_v35 }
  0xf2   :  { %v6410_v58 = vpop.f32.mrf.mxu0  ;;  %5146 = vmatprep.subr.mxu1 %v6306_v59 }
  0xf6   :  { %v4700_v14 = vpop.f32.mrf.mxu1 }
  0xf7   :  { %v314_v16 = vadd.f32 %v4700_v14, %v6385_v5 }
  0xf8   :  { %v307_v8 = vpop.f32.mrf.mxu1 }
  0xf9   :  { %v308_v43 = vadd.f32 %v307_v8, %v6410_v58 }
  0xfc   :  { %v6424_v10 = vpop.f32.mrf.mxu0 }
  0xfe   :  { %v6448_v31 = vpop.f32.mrf.mxu0 }
 0x101   :  { %v4722_v27 = vpop.f32.mrf.mxu0 }
 0x102   :  { %v421_v24 = vadd.f32 %v4722_v27, %v314_v16 }
 0x103   :  { %v413_v30 = vpop.f32.mrf.mxu0  ;;  %v4703_v40 = vpop.f32.mrf.mxu1 }
 0x104   :  { %v326_v57 = vadd.f32 %v4703_v40, %v6424_v10  ;;  %v414_v3 = vadd.f32 %v413_v30, %v308_v43 }
 0x105   :  { %v319_v22 = vpop.f32.mrf.mxu1 }
 0x107   :  { %v4725_v42 = vpop.f32.mrf.mxu0 }
 0x109   :  { %v427_v2 = vpop.f32.mrf.mxu0 }
 0x10c   :  { %v4744_v46 = vpop.f32.mrf.mxu1 }
 0x10d   :  { %v524_v1 = vadd.f32 %v4744_v46, %v421_v24 }
 0x10e   :  { %v515_v52 = vpop.f32.mrf.mxu1 }
 0x111   :  { %v4747_v21 = vpop.f32.mrf.mxu1 }
 0x113   :  { %v531_v49 = vpop.f32.mrf.mxu1 }
 0x116   :  { %v4766_v50 = vpop.f32.mrf.mxu0 }
 0x118   :  { %v634_v54 = vpop.f32.mrf.mxu0 }
 0x11b   :  { %v4769_v62 = vpop.f32.mrf.mxu0 }
 0x11d   :  { %v6460_v12 = vpop.f32.mrf.mxu0 }
 0x120   :  { %v4788_v36 = vpop.f32.mrf.mxu1 }
 0x122   :  { %v731_v28 = vpop.f32.mrf.mxu1 }
 0x125   :  { %v4791_v37 = vpop.f32.mrf.mxu1 }
 0x127   :  { %v6462_v13 = vpop.f32.mrf.mxu1 }
 0x12a   :  { %v4810_v0 = vpop.f32.mrf.mxu0 }
 0x12c   :  { %v840_v32 = vpop.f32.mrf.mxu0 }
 0x12f   :  { %v4813_v39 = vpop.f32.mrf.mxu0 }
 0x131   :  { %v6464_v38 = vpop.f32.mrf.mxu0 }
 0x134   :  { %v4832_v35 = vpop.f32.mrf.mxu1 }
 0x136   :  { %v981_v4 = vpop.f32.mrf.mxu1 }
 0x139   :  { %v6468_v20 = vpop.f32.mrf.mxu1 }
 0x13b   :  { %v6472_v26 = vpop.f32.mrf.mxu1 }
 0x13e   :  { %v4854_v11 = vpop.f32.mrf.mxu0 }
 0x140   :  { %v6466_v55 = vpop.f32.mrf.mxu0 }
 0x143   :  { %v6470_v47 = vpop.f32.mrf.mxu0 }
 0x145   :  { %v6474_v15 = vpop.f32.mrf.mxu0 }
 0x146   :  { %7150 = vst [vmem:[#allocation44_spill] sm:$0xff] %v6474_v15 }
 0x148   :  { %v4876_v45 = vpop.f32.mrf.mxu1 }
 0x14a   :  { %v6478_v18 = vpop.f32.mrf.mxu1 }
 0x14d   :  { %v6482_v29 = vpop.f32.mrf.mxu1 }
 0x14e   :  { %7152 = vst [vmem:[#allocation46_spill] sm:$0xff] %v6482_v29 }
 0x14f   :  { %v6486_v9 = vpop.f32.mrf.mxu1 }
 0x150   :  { %7154 = vst [vmem:[#allocation48_spill] sm:$0xff] %v6486_v9  ;;  %v516_v9 = vadd.f32 %v515_v52, %v414_v3 }
 0x152   :  { %v6476_v33 = vpop.f32.mrf.mxu0 }
 0x154   :  { %v6480_v6 = vpop.f32.mrf.mxu0 }
 0x155   :  { %7151 = vst [vmem:[#allocation45_spill] sm:$0xff] %v6480_v6 }
 0x157   :  { %v6484_v60 = vpop.f32.mrf.mxu0 }
 0x158   :  { %7153 = vst [vmem:[#allocation47_spill] sm:$0xff] %v6484_v60 }
 0x159   :  { %v6490_v61 = vpop.f32.mrf.mxu0 }
 0x15a   :  { %7156 = vst [vmem:[#allocation50_spill] sm:$0xff] %v6490_v61 }
 0x15c   :  { %v6488_v53 = vpop.f32.mrf.mxu1 }
 0x15d   :  { %7155 = vst [vmem:[#allocation49_spill] sm:$0xff] %v6488_v53  ;;  %v635_v53 = vadd.f32 %v634_v54, %v516_v9  ;;  %v7163_v54 = vld [vmem:[#allocation44_spill] sm:$0xff] }
 0x15e   :  { %v6492_v23 = vpop.f32.mrf.mxu1 }
 0x15f   :  { %7157 = vst [vmem:[#allocation51_spill] sm:$0xff] %v6492_v23  ;;  %v641_v23 = vadd.f32 %v4766_v50, %v524_v1  ;;  %v732_v58 = vadd.f32 %v731_v28, %v635_v53 }
 0x161   :  { %v6494_v7 = vpop.f32.mrf.mxu1  ;;  %v738_v5 = vadd.f32 %v4788_v36, %v641_v23  ;;  %v841_v8 = vadd.f32 %v840_v32, %v732_v58 }
 0x162   :  { %7158 = vst [vmem:[#allocation52_spill] sm:$0xff] %v6494_v7  ;;  %v320_v7 = vadd.f32 %v319_v22, %v6448_v31 }
 0x163   :  { %v6496_v48 = vpop.f32.mrf.mxu1  ;;  %v851_v16 = vadd.f32 %v4810_v0, %v738_v5  ;;  %v982_v1 = vadd.f32 %v981_v4, %v841_v8 }
 0x164   :  { %7159 = vst [vmem:[#allocation53_spill] sm:$0xff] %v6496_v48  ;;  %v435_v48 = vadd.f32 %v4725_v42, %v326_v57  ;;  %v428_v6 = vadd.f32 %v427_v2, %v320_v7 }
 0x165   :  { %v988_v30 = vadd.f32 %v4832_v35, %v851_v16 }
 0x166   :  { %v540_v15 = vadd.f32 %v4747_v21, %v435_v48  ;;  %v532_v43 = vadd.f32 %v531_v49, %v428_v6  ;;  %v1088_v6 = vadd.f32 %v6466_v55, %v982_v1  ;;  %v7160_v55 = vld [vmem:[#allocation46_spill] sm:$0xff]  ;;  %v7164_v21 = vld [vmem:[#allocation47_spill] sm:$0xff] }
 0x167   :  { %v4942_v25 = vpop.f32.mrf.mxu0  ;;  %v1095_v31 = vadd.f32 %v4854_v11, %v988_v30 }
 0x168   :  { %v653_v29 = vadd.f32 %v4769_v62, %v540_v15  ;;  %v647_v57 = vadd.f32 %v6460_v12, %v532_v43  ;;  %v1190_v11 = vadd.f32 %v6478_v18, %v1088_v6  ;;  %v4219_v12 = vld [vmem:[#allocation2 + $0xc0] ss:$0 sm:$0xff]  ;;  %v7168_v43 = vld [vmem:[#allocation50_spill] sm:$0xff] }
 0x169   :  { %v1534_v34 = vpop.f32.mrf.mxu0  ;;  %v7167_v35 = vld [vmem:[#allocation52_spill] sm:$0xff] }
 0x16a   :  { %v750_v24 = vadd.f32 %v4791_v37, %v653_v29  ;;  %v744_v15 = vadd.f32 %v6462_v13, %v647_v57  ;;  %v1198_v29 = vadd.f32 %v4876_v45, %v1095_v31 }
 0x16b   :  { %v7169_v1 = vld [vmem:[#allocation53_spill] sm:$0xff] }
 0x16c   :  { %v871_v3 = vadd.f32 %v4813_v39, %v750_v24  ;;  %v7166_v39 = vld [vmem:[#allocation48_spill] sm:$0xff] }
 0x16e   :  { %v1000_v53 = vadd.f32 %v6468_v20, %v871_v3 }
 0x16f   :  { %v4964_v17 = vpop.f32.mrf.mxu1 }
 0x170   :  { %v1682_v40 = vadd.f32 %v4964_v17, %v4942_v25  ;;  %v861_v25 = vadd.f32 %v6464_v38, %v744_v15  ;;  %v1109_v4 = vadd.f32 %v6470_v47, %v1000_v53 }
 0x171   :  { %v1675_v19 = vpop.f32.mrf.mxu1 }
 0x172   :  { %v1676_v23 = vadd.f32 %v1675_v19, %v1534_v34  ;;  %v1315_v19 = vadd.f32 %v6476_v33, %v1198_v29  ;;  %v994_v20 = vadd.f32 %v6472_v26, %v861_v25  ;;  %v1214_v45 = vadd.f32 %v7160_v55, %v1109_v4 }
 0x174   :  { %v4945_v51 = vpop.f32.mrf.mxu0  ;;  %v1102_v33 = vadd.f32 %v7163_v54, %v994_v20  ;;  %v1327_v62 = vadd.f32 %v7164_v21, %v1214_v45 }
 0x176   :  { %v1554_v63 = vpop.f32.mrf.mxu0  ;;  %v1206_v13 = vadd.f32 %v7166_v39, %v1102_v33  ;;  %v1424_v5 = vadd.f32 %v7167_v35, %v1327_v62  ;;  %v7171_v39 = vld [vmem:[#allocation10_spill] sm:$0xff] }
 0x178   :  { %v1321_v24 = vadd.f32 %v7168_v43, %v1206_v13 }
 0x179   :  { %v4986_v56 = vpop.f32.mrf.mxu0 }
 0x17a   :  { %v1789_v42 = vadd.f32 %v4986_v56, %v1682_v40  ;;  %v1418_v31 = vadd.f32 %v7169_v1, %v1321_v24  ;;  %v7178_v1 = vld [vmem:[#allocation15_spill] sm:$0xff] }
 0x17b   :  { %v4967_v44 = vpop.f32.mrf.mxu1  ;;  %v1781_v41 = vpop.f32.mrf.mxu0 }
 0x17c   :  { %v1694_v7 = vadd.f32 %v4967_v44, %v4945_v51  ;;  %v1782_v22 = vadd.f32 %v1781_v41, %v1676_v23  ;;  %v7161_v41 = vld [vmem:[#allocation45_spill] sm:$0xff] }
 0x17d   :  { %v1687_v59 = vpop.f32.mrf.mxu1 }
 0x17e   :  { %v1688_v46 = vadd.f32 %v1687_v59, %v1554_v63  ;;  %v1309_v59 = vadd.f32 %v7161_v41, %v1190_v11  ;;  %v7162_v63 = vld [vmem:[#allocation49_spill] sm:$0xff] }
 0x17f   :  { %v4989_v61 = vpop.f32.mrf.mxu0 }
 0x180   :  { %v1803_v51 = vadd.f32 %v4989_v61, %v1694_v7  ;;  %v7165_v61 = vld [vmem:[#allocation51_spill] sm:$0xff] }
 0x181   :  { %v1795_v14 = vpop.f32.mrf.mxu0  ;;  %v1406_v49 = vadd.f32 %v7165_v61, %v1309_v59 }
 0x182   :  { %v1796_v50 = vadd.f32 %v1795_v14, %v1688_v46 }
 0x184   :  { %v5008_v60 = vpop.f32.mrf.mxu1 }
 0x185   :  { %v1892_v17 = vadd.f32 %v5008_v60, %v1789_v42  ;;  %v1412_v60 = vadd.f32 %v7162_v63, %v1315_v19 }
 0x186   :  { %v1883_v27 = vpop.f32.mrf.mxu1 }
 0x187   :  { %v1884_v34 = vadd.f32 %v1883_v27, %v1782_v22 }
 0x189   :  { %v5011_v48 = vpop.f32.mrf.mxu1 }
 0x18a   :  { %v1908_v47 = vadd.f32 %v5011_v48, %v1803_v51 }
 0x18b   :  { %v1899_v56 = vpop.f32.mrf.mxu1 }
 0x18c   :  { %v1900_v0 = vadd.f32 %v1899_v56, %v1796_v50 }
 0x18e   :  { %v5030_v10 = vpop.f32.mrf.mxu0 }
 0x18f   :  { %v2009_v2 = vadd.f32 %v5030_v10, %v1892_v17 }
 0x190   :  { %v2002_v9 = vpop.f32.mrf.mxu0 }
 0x191   :  { %v2003_v52 = vadd.f32 %v2002_v9, %v1884_v34 }
 0x192   :  { %v5033_v44 = vpop.f32.mrf.mxu0 }
 0x193   :  { %v2021_v28 = vadd.f32 %v5033_v44, %v1908_v47 }
 0x194   :  { %v2014_v36 = vpop.f32.mrf.mxu0 }
 0x195   :  { %v2015_v58 = vadd.f32 %v2014_v36, %v1900_v0 }
 0x196   :  { %v5052_v38 = vpop.f32.mrf.mxu1 }
 0x197   :  { %v2106_v18 = vadd.f32 %v5052_v38, %v2009_v2 }
 0x198   :  { %v2099_v26 = vpop.f32.mrf.mxu1 }
 0x199   :  { %v2122_v32 = vadd.f32 %v2106_v18, %v1412_v60  ;;  %v2100_v37 = vadd.f32 %v2099_v26, %v2003_v52 }
 0x19a   :  { %v5055_v14 = vpop.f32.mrf.mxu1 }
 0x19b   :  { %v2131_v16 = vadd.f32 %v4219_v12, %v2122_v32  ;;  %v2121_v27 = vadd.f32 %v2100_v37, %v1406_v49  ;;  %v2118_v10 = vadd.f32 %v5055_v14, %v2021_v28  ;;  %v7170_v32 = vld [vmem:[#allocation8_spill] sm:$0xff]  ;;  %v7172_v14 = vld [vmem:[#allocation13_spill] sm:$0xff] }
 0x19c   :  { %v2111_v8 = vpop.f32.mrf.mxu1 }
 0x19d   :  { %v2135_v30 = vmax.f32 %v2131_v16, 0.0  ;;  %v2130_v40 = vadd.f32 %v4219_v12, %v2121_v27  ;;  %v2124_v57 = vadd.f32 %v2118_v10, %v1424_v5  ;;  %v2112_v3 = vadd.f32 %v2111_v8, %v2015_v58  ;;  %v7173_v27 = vld [vmem:[#allocation16_spill] sm:$0xff]  ;;  %v7174_v8 = vld [vmem:[#allocation19_spill] sm:$0xff] }
 0x19f   :  { %v2134_v48 = vmax.f32 %v2130_v40, 0.0  ;;  %v2133_v9 = vadd.f32 %v4219_v12, %v2124_v57  ;;  %v2123_v23 = vadd.f32 %v2112_v3, %v1418_v31  ;;  %v2143_v42 = vrot.slane %v2135_v30, 1  ;;  %v7176_v40 = vld [vmem:[#allocation12_spill] sm:$0xff]  ;;  %v7177_v57 = vld [vmem:[#allocation22_spill] sm:$0xff]  ;;  %v7179_v31 = vld [vmem:[#allocation25_spill] sm:$0xff] }
 0x1a0   :  { %v2160_v29 = vrot.slane %v2135_v30, 2 }
 0x1a1   :  { %v2142_v7 = vrot.slane %v2134_v48, 1  ;;  %v2159_v15 = vrot.slane %v2134_v48, 2  ;;  %v2137_v53 = vmax.f32 %v2133_v9, 0.0  ;;  %v2132_v6 = vadd.f32 %v4219_v12, %v2123_v23  ;;  %v7181_v9 = vld [vmem:[#allocation28_spill] sm:$0xff]  ;;  %v7182_v23 = vld [vmem:[#allocation21_spill] sm:$0xff] }
 0x1a3   :  { %v2144_v22 = vsel %vm58_vm0, %v2142_v7, %v2143_v42  ;;  %v2147_v46 = vrot.slane %v2137_v53, 1  ;;  %v2136_v25 = vmax.f32 %v2132_v6, 0.0  ;;  %v2164_v11 = vrot.slane %v2137_v53, 2  ;;  %v7187_v6 = vld [vmem:[#allocation37_spill] sm:$0xff] }
 0x1a4   :  { %v2155_v17 = vmax.f32 %v2134_v48, %v2144_v22  ;;  %v2161_v19 = vsel %vm1427_vm2, %v2159_v15, %v2160_v29  ;;  %v7180_v48 = vld [vmem:[#allocation18_spill] sm:$0xff]  ;;  %v7189_v22 = vld [vmem:[#allocation40_spill] sm:$0xff] }
 0x1a5   :  { %v2154_v4 = vsel %vm58_vm0, %v2147_v46, %v2142_v7  ;;  %v2145_v44 = vrot.slane %v2136_v25, 1  ;;  %v2162_v51 = vrot.slane %v2136_v25, 2  ;;  %v2171_v63 = vsel %vm1427_vm2, %v2164_v11, %v2159_v15  ;;  %v7184_v7 = vld [vmem:[#allocation24_spill] sm:$0xff]  ;;  %v7185_v15 = vld [vmem:[#allocation33_spill] sm:$0xff] }
 0x1a6   :  { %v2158_v56 = vmax.f32 %v2137_v53, %v2154_v4  ;;  %v2172_v34 = vmax.f32 %v2155_v17, %v2161_v19  ;;  %v7186_v53 = vld [vmem:[#allocation27_spill] sm:$0xff]  ;;  %v7191_v17 = vld [vmem:[#allocation36_spill] sm:$0xff]  ;;  %v7193_v4 = vld [vmem:[#allocation42_spill] sm:$0xff] }
 0x1a7   :  { %v2146_v2 = vsel %vm58_vm0, %v2143_v42, %v2145_v44  ;;  %v2148_v20 = vsel %vm58_vm0, %v2145_v44, %v2147_v46  ;;  %v2163_v60 = vsel %vm1427_vm2, %v2160_v29, %v2162_v51  ;;  %v2165_v38 = vsel %vm1427_vm2, %v2162_v51, %v2164_v11  ;;  %v7183_v42 = vld [vmem:[#allocation30_spill] sm:$0xff]  ;;  %v7188_v29 = vld [vmem:[#allocation31_spill] sm:$0xff]  ;;  %v7190_v46 = vld [vmem:[#allocation32_spill] sm:$0xff] }
 0x1a8   :  { %v2195_v55 = vsel %vm2193_vm3, %v2172_v34, 0  ;;  %v2156_v45 = vmax.f32 %v2135_v30, %v2146_v2  ;;  %v2157_v41 = vmax.f32 %v2136_v25, %v2148_v20  ;;  %v2175_v50 = vmax.f32 %v2158_v56, %v2171_v63  ;;  %v7175_v30 = vld [vmem:[#allocation9_spill] sm:$0xff]  ;;  %v7192_v25 = vld [vmem:[#allocation39_spill] sm:$0xff]  ;;  %v7195_v19 = vld [vmem:[#allocation14_spill] sm:$0xff] }
 0x1a9   :  { %v6527_v59 = vand.u32 4294901760, %v2195_v55  ;;  %v7194_v11 = vld [vmem:[#allocation11_spill] sm:$0xff]  ;;  %v7196_v56 = vld [vmem:[#allocation17_spill] sm:$0xff]  ;;  %v7197_v44 = vld [vmem:[#allocation20_spill] sm:$0xff] }
 0x1aa   :  { %v2173_v47 = vmax.f32 %v2156_v45, %v2163_v60  ;;  %v2174_v52 = vmax.f32 %v2157_v41, %v2165_v38  ;;  %v2204_v54 = vsel %vm2193_vm3, %v2175_v50, 0  ;;  %v7198_v51 = vld [vmem:[#allocation23_spill] sm:$0xff]  ;;  %v7199_v34 = vld [vmem:[#allocation26_spill] sm:$0xff]  ;;  %v7200_v2 = vld [vmem:[#allocation29_spill] sm:$0xff] }
 0x1ab   :  { %5110 = vmatprep.mubr.f32.mxu1 %v6527_v59  ;;  %v2284_v18 = vsub.f32 %v2195_v55, %v6527_v59  ;;  %v6537_v61 = vand.u32 4294901760, %v2204_v54  ;;  %v7201_v20 = vld [vmem:[#allocation34_spill] sm:$0xff]  ;;  %v7202_v55 = vld [vmem:[#allocation35_spill] sm:$0xff]  ;;  %v7204_v41 = vld [vmem:[#allocation41_spill] sm:$0xff] }
 0x1ac   :  { %v2198_v33 = vsel %vm2193_vm3, %v2173_v47, 0  ;;  %v2201_v21 = vsel %vm2193_vm3, %v2174_v52, 0  ;;  %v7203_v45 = vld [vmem:[#allocation38_spill] sm:$0xff]  ;;  %v2960_v63 = vld [vmem:[#allocation4 + $0x58] sm:$0xff]  ;;  %v2959_v38 = vld [vmem:[#allocation4 + $0x50] sm:$0xff] }
 0x1ad   :  { %v2285_v62 = vand.u32 4294901760, %v2284_v18  ;;  %v6539_v49 = vand.u32 4294901760, %v2198_v33  ;;  %v6541_v36 = vand.u32 4294901760, %v2201_v21  ;;  %v6544_v26 = vsub.f32 %v2204_v54, %v6537_v61  ;;  %v2958_v52 = vld [vmem:[#allocation4 + $0x48] sm:$0xff] }
 0x1ae   :  { %v6666_v60 = vand.u32 4294901760, %v2960_v63  ;;  %v6671_v47 = vand.u32 4294901760, %v2959_v38 }
 0x1af   :  { %v2286_v12 = vsub.f32 %v2284_v18, %v2285_v62  ;;  %v6547_v0 = vsub.f32 %v2198_v33, %v6539_v49  ;;  %5111 = vmatmul.mubr.f32.vlgmr.msra.gmra.mxu1 %v6539_v49  ;;  %v6551_v28 = vsub.f32 %v2201_v21, %v6541_v36  ;;  %v2315_v5 = vand.u32 4294901760, %v6544_v26  ;;  %v2957_v21 = vld [vmem:[#allocation4 + $0x40] sm:$0xff] }
 0x1b0   :  { %5147 = vmatpush3.msra.mxu1 %v7170_v32  ;;  %5113 = vmatprep.mubr.f32.mxu1 %v6541_v36  ;;  %v6669_v50 = vsub.f32 %v2960_v63, %v6666_v60  ;;  %v6679_v54 = vsub.f32 %v2959_v38, %v6671_v47  ;;  %v6681_v33 = vand.u32 4294901760, %v2958_v52 }
 0x1b1   :  { %v2287_v37 = vand.u32 4294901760, %v2286_v12  ;;  %5148 = vmatprep.subr.mxu1 %v7171_v39  ;;  %v2295_v13 = vand.u32 4294901760, %v6547_v0  ;;  %v2305_v35 = vand.u32 4294901760, %v6551_v28  ;;  %v2316_v24 = vsub.f32 %v6544_v26, %v2315_v5  ;;  %v2956_v12 = vld [vmem:[#allocation4 + $0x38] sm:$0xff] }
 0x1b2   :  { %5149 = vmatpush3.msra.mxu1 %v7171_v39 }
 0x1b3   :  { %5080 = vmatprep.mubr.f32.mxu0 %v2287_v37  ;;  %5150 = vmatprep.subr.mxu1 %v7172_v14  ;;  %v2296_v58 = vsub.f32 %v6547_v0, %v2295_v13  ;;  %v2306_v16 = vsub.f32 %v6551_v28, %v2305_v35  ;;  %v2317_v3 = vand.u32 4294901760, %v2316_v24  ;;  %v6706_v37 = vand.u32 4294901760, %v2956_v12 }
 0x1b4   :  { %5114 = vmatmul.mubr.f32.gmra.mxu1 %v6537_v61 }
 0x1b5   :  { %5151 = vmatpush3.msra.mxu1 %v7172_v14  ;;  %5170 = vmatprep.mubr.f32.mxu1 %v2285_v62  ;;  %v2297_v10 = vand.u32 4294901760, %v2296_v58  ;;  %v2307_v43 = vand.u32 4294901760, %v2306_v16  ;;  %v6717_v58 = vsub.f32 %v2956_v12, %v6706_v37  ;;  %v2954_v16 = vld [vmem:[#allocation4 + $0x28] sm:$0xff] }
 0x1b6   :  { %5152 = vmatprep.subr.mxu1 %v7173_v27  ;;  %v6725_v24 = vand.u32 4294901760, %v2954_v16 }
 0x1b7   :  { %5153 = vmatpush3.msra.mxu1 %v7173_v27  ;;  %5081 = vmatmul.mubr.f32.vlgmr.msra.gmra.mxu0 %v2297_v10 }
 0x1b8   :  { %5154 = vmatprep.subr.mxu1 %v7174_v8  ;;  %5117 = vmatpush3.msra.mxu0 %v7175_v30  ;;  %v2953_v30 = vld [vmem:[#allocation4 + $0x20] sm:$0xff] }
 0x1b9   :  { %5155 = vmatpush3.msra.mxu1 %v7174_v8  ;;  %5083 = vmatprep.mubr.f32.mxu0 %v2307_v43 }
 0x1ba   :  { %5118 = vmatprep.subr.mxu0 %v7176_v40  ;;  %5156 = vmatprep.subr.mxu1 %v7177_v57 }
 0x1bb   :  { %5119 = vmatpush3.msra.mxu0 %v7176_v40  ;;  %5157 = vmatpush3.msra.mxu1 %v7177_v57 }
 0x1bc   :  { %5120 = vmatprep.subr.mxu0 %v7178_v1  ;;  %5158 = vmatprep.subr.mxu1 %v7179_v31 }
 0x1bd   :  { %5084 = vmatmul.mubr.f32.gmra.mxu0 %v2317_v3  ;;  %5159 = vmatpush3.msra.mxu1 %v7179_v31  ;;  %v6736_v3 = vsub.f32 %v2954_v16, %v6725_v24 }
 0x1be   :  { %5121 = vmatpush3.msra.mxu0 %v7178_v1  ;;  %5140 = vmatprep.mubr.f32.mxu0 %v2284_v18  ;;  %v6676_v18 = vand.u32 4294901760, %v6669_v50  ;;  %v6738_v1 = vand.u32 4294901760, %v2953_v30 }
 0x1bf   :  { %5122 = vmatprep.subr.mxu0 %v7180_v48  ;;  %5160 = vmatprep.subr.mxu1 %v7181_v9 }
 0x1c0   :  { %5123 = vmatpush3.msra.mxu0 %v7180_v48  ;;  %5161 = vmatpush3.msra.mxu1 %v7181_v9  ;;  %v3107_v62 = vsub.f32 %v6669_v50, %v6676_v18  ;;  %v2952_v48 = vld [vmem:[#allocation4 + $0x18] sm:$0xff] }
 0x1c1   :  { %5124 = vmatprep.subr.mxu0 %v7182_v23  ;;  %5162 = vmatprep.subr.mxu1 %v7183_v42 }
 0x1c2   :  { %5125 = vmatpush3.msra.mxu0 %v7182_v23  ;;  %5163 = vmatpush3.msra.mxu1 %v7183_v42  ;;  %v6747_v23 = vand.u32 4294901760, %v6736_v3 }
 0x1c3   :  { %5126 = vmatprep.subr.mxu0 %v7184_v7  ;;  %5164 = vmatprep.subr.mxu1 %v7185_v15 }
 0x1c4   :  { %5127 = vmatpush3.msra.mxu0 %v7184_v7  ;;  %5165 = vmatpush3.msra.mxu1 %v7185_v15  ;;  %7207 = vst [vmem:[#allocation45_spill] sm:$0xff] %v6747_v23  ;;  %v6752_v7 = vand.u32 4294901760, %v2952_v48 }
 0x1c5   :  { %5128 = vmatprep.subr.mxu0 %v7186_v53  ;;  %5166 = vmatprep.subr.mxu1 %v7187_v6 }
 0x1c6   :  { %5129 = vmatpush3.msra.mxu0 %v7186_v53  ;;  %5167 = vmatpush3.msra.mxu1 %v7187_v6  ;;  %v2951_v53 = vld [vmem:[#allocation4 + $0x10] sm:$0xff] }
 0x1c7   :  { %5130 = vmatprep.subr.mxu0 %v7188_v29  ;;  %5168 = vmatprep.subr.mxu1 %v7189_v22 }
 0x1c8   :  { %5131 = vmatpush3.msra.mxu0 %v7188_v29  ;;  %5169 = vmatpush3.msra.mxu1 %v7189_v22  ;;  %v3149_v29 = vsub.f32 %v6736_v3, %v6747_v23 }
 0x1c9   :  { %5132 = vmatprep.subr.mxu0 %v7190_v46  ;;  %5171 = vmatmul.mubr.f32.vlgmr.msra.gmra.mxu1 %v2295_v13 }
 0x1ca   :  { %5206 = vmatprep.subr.mxu1 %v7170_v32  ;;  %5133 = vmatpush3.msra.mxu0 %v7190_v46  ;;  %v6762_v46 = vsub.f32 %v2952_v48, %v6752_v7  ;;  %v4220_v48 = vld [vmem:[#allocation2 + $0x128] ss:$0 sm:$0xff] }
 0x1cb   :  { %5173 = vmatprep.mubr.f32.mxu1 %v2305_v35  ;;  %5207 = vmatpush3.msra.mxu1 %v7170_v32 }
 0x1cc   :  { %5134 = vmatprep.subr.mxu0 %v7191_v17  ;;  %5208 = vmatprep.subr.mxu1 %v7171_v39 }
 0x1cd   :  { %5135 = vmatpush3.msra.mxu0 %v7191_v17  ;;  %5209 = vmatpush3.msra.mxu1 %v7171_v39  ;;  %v2955_v39 = vld [vmem:[#allocation4 + $0x30] sm:$0xff]  ;;  %v6765_v17 = vand.u32 4294901760, %v2951_v53 }
 0x1ce   :  { %5136 = vmatprep.subr.mxu0 %v7192_v25  ;;  %5174 = vmatmul.mubr.f32.gmra.mxu1 %v2315_v5 }
 0x1cf   :  { %5210 = vmatprep.subr.mxu1 %v7172_v14  ;;  %5137 = vmatpush3.msra.mxu0 %v7192_v25  ;;  %v2950_v25 = vld [vmem:[#allocation4 + $0x8] sm:$0xff] }
 0x1d0   :  { %5211 = vmatpush3.msra.mxu1 %v7172_v14  ;;  %5230 = vmatprep.mubr.f32.mxu1 %v6527_v59  ;;  %v6714_v14 = vand.u32 4294901760, %v2955_v39 }
 0x1d1   :  { %5138 = vmatprep.subr.mxu0 %v7193_v4  ;;  %5212 = vmatprep.subr.mxu1 %v7173_v27 }
 0x1d2   :  { %5139 = vmatpush3.msra.mxu0 %v7193_v4  ;;  %5213 = vmatpush3.msra.mxu1 %v7173_v27  ;;  %v6723_v43 = vsub.f32 %v2955_v39, %v6714_v14  ;;  %v3150_v4 = vand.u32 4294901760, %v3149_v29 }
 0x1d3   :  { %5141 = vmatmul.mubr.f32.vlgmr.msra.gmra.mxu0 %v6547_v0  ;;  %5176 = vmatprep.subr.mxu0 %v7194_v11 }
 0x1d4   :  { %5214 = vmatprep.subr.mxu1 %v7174_v8  ;;  %5143 = vmatprep.mubr.f32.mxu0 %v6551_v28 }
 0x1d5   :  { %5177 = vmatpush3.msra.mxu0 %v7194_v11  ;;  %5215 = vmatpush3.msra.mxu1 %v7174_v8  ;;  %v6729_v8 = vand.u32 4294901760, %v6717_v58 }
 0x1d6   :  { %5178 = vmatprep.subr.mxu0 %v7195_v19  ;;  %5216 = vmatprep.subr.mxu1 %v7177_v57 }
 0x1d7   :  { %5179 = vmatpush3.msra.mxu0 %v7195_v19  ;;  %5217 = vmatpush3.msra.mxu1 %v7177_v57  ;;  %v6733_v57 = vand.u32 4294901760, %v6723_v43  ;;  %v6771_v19 = vand.u32 4294901760, %v6762_v46 }
 0x1d8   :  { %5144 = vmatmul.mubr.f32.gmra.mxu0 %v6544_v26  ;;  %5180 = vmatprep.subr.mxu0 %v7196_v56  ;;  %v3108_v26 = vand.u32 4294901760, %v3107_v62 }
 0x1d9   :  { %5218 = vmatprep.subr.mxu1 %v7179_v31  ;;  %5181 = vmatpush3.msra.mxu0 %v7196_v56  ;;  %7206 = vst [vmem:[#allocation46_spill] sm:$0xff] %v6733_v57  ;;  %7209 = vst [vmem:[#allocation44_spill] sm:$0xff] %v6771_v19  ;;  %v6773_v56 = vand.u32 4294901760, %v2950_v25 }
 0x1da   :  { %5200 = vmatprep.mubr.f32.mxu0 %v6527_v59  ;;  %5219 = vmatpush3.msra.mxu1 %v7179_v31  ;;  %v7205_v59 = vld [vmem:[#allocation43_spill] sm:$0xff]  ;;  %v3135_v31 = vsub.f32 %v6717_v58, %v6729_v8 }
 0x1db   :  { %5182 = vmatprep.subr.mxu0 %v7197_v44  ;;  %5220 = vmatprep.subr.mxu1 %v7181_v9 }
 0x1dc   :  { %5183 = vmatpush3.msra.mxu0 %v7197_v44  ;;  %5221 = vmatpush3.msra.mxu1 %v7181_v9  ;;  %v3142_v9 = vsub.f32 %v6723_v43, %v6733_v57  ;;  %v6777_v44 = vsub.f32 %v2951_v53, %v6765_v17 }
 0x1dd   :  { %5184 = vmatprep.subr.mxu0 %v7198_v51  ;;  %5222 = vmatprep.subr.mxu1 %v7183_v42 }
 0x1de   :  { %5185 = vmatpush3.msra.mxu0 %v7198_v51  ;;  %5223 = vmatpush3.msra.mxu1 %v7183_v42  ;;  %v6750_v42 = vsub.f32 %v2953_v30, %v6738_v1  ;;  %v2949_v51 = vld [vmem:[#allocation4] sm:$0xff] }
 0x1df   :  { %5186 = vmatprep.subr.mxu0 %v7199_v34  ;;  %5224 = vmatprep.subr.mxu1 %v7185_v15 }
 0x1e0   :  { %5187 = vmatpush3.msra.mxu0 %v7199_v34  ;;  %5225 = vmatpush3.msra.mxu1 %v7185_v15  ;;  %v3136_v15 = vand.u32 4294901760, %v3135_v31 }
 0x1e1   :  { %5188 = vmatprep.subr.mxu0 %v7200_v2  ;;  %5226 = vmatprep.subr.mxu1 %v7187_v6 }
 0x1e2   :  { %5189 = vmatpush3.msra.mxu0 %v7200_v2  ;;  %5227 = vmatpush3.msra.mxu1 %v7187_v6  ;;  %v3143_v6 = vand.u32 4294901760, %v3142_v9  ;;  %v3163_v2 = vsub.f32 %v6762_v46, %v6771_v19 }
 0x1e3   :  { %5190 = vmatprep.subr.mxu0 %v7201_v20  ;;  %5228 = vmatprep.subr.mxu1 %v7189_v22 }
 0x1e4   :  { %5191 = vmatpush3.msra.mxu0 %v7201_v20  ;;  %5229 = vmatpush3.msra.mxu1 %v7189_v22  ;;  %v6759_v22 = vand.u32 4294901760, %v6750_v42  ;;  %v6783_v20 = vsub.f32 %v2950_v25, %v6773_v56 }
 0x1e5   :  { %5192 = vmatprep.subr.mxu0 %v7202_v55  ;;  %5231 = vmatmul.mubr.f32.vlgmr.msra.gmra.mxu1 %v6539_v49 }
 0x1e6   :  { %5193 = vmatpush3.msra.mxu0 %v7202_v55  ;;  %5233 = vmatprep.mubr.f32.mxu1 %v6541_v36  ;;  %7208 = vst [vmem:[#allocation49_spill] sm:$0xff] %v6759_v22  ;;  %v3156_v11 = vsub.f32 %v6750_v42, %v6759_v22  ;;  %v6785_v55 = vand.u32 4294901760, %v2949_v51 }
 0x1e7   :  { %5194 = vmatprep.subr.mxu0 %v7203_v45  ;;  %5266 = vmatprep.subr.mxu1 %v3108_v26 }
 0x1e8   :  { %5195 = vmatpush3.msra.mxu0 %v7203_v45  ;;  %5267 = vmatpush3.msra.mxu1 %v3108_v26  ;;  %v3157_v34 = vand.u32 4294901760, %v3156_v11  ;;  %v6789_v45 = vand.u32 4294901760, %v6777_v44  ;;  %v6796_v63 = vsub.f32 %v2949_v51, %v6785_v55 }
 0x1e9   :  { %5196 = vmatprep.subr.mxu0 %v7204_v41  ;;  %5234 = vmatmul.mubr.f32.gmra.mxu1 %v6537_v61 }
 0x1ea   :  { %5197 = vmatpush3.msra.mxu0 %v7204_v41  ;;  %7210 = vst [vmem:[#allocation47_spill] sm:$0xff] %v6789_v45  ;;  %v3164_v41 = vand.u32 4294901760, %v3163_v2  ;;  %v3170_v38 = vsub.f32 %v6777_v44, %v6789_v45 }
 0x1eb   :  { %5198 = vmatprep.subr.mxu0 %v7205_v59 }
 0x1ec   :  { %5199 = vmatpush3.msra.mxu0 %v7205_v59  ;;  %v6793_v59 = vand.u32 4294901760, %v6783_v20  ;;  %v3171_v62 = vand.u32 4294901760, %v3170_v38 }
 0x1ed   :  { %5201 = vmatmul.mubr.f32.vlgmr.msra.gmra.mxu0 %v6539_v49  ;;  %5236 = vmatprep.subr.mxu0 %v6666_v60  ;;  %v6691_v49 = vsub.f32 %v2958_v52, %v6681_v33 }
 0x1ee   :  { %5203 = vmatprep.mubr.f32.mxu0 %v6541_v36  ;;  %5237 = vmatpush3.msra.mxu0 %v6666_v60  ;;  %v6693_v36 = vand.u32 4294901760, %v2957_v21  ;;  %7211 = vst [vmem:[#allocation51_spill] sm:$0xff] %v6793_v59  ;;  %v3177_v52 = vsub.f32 %v6783_v20, %v6793_v59 }
 0x1ef   :  { %5238 = vmatprep.subr.mxu0 %v6671_v47  ;;  %v6700_v28 = vand.u32 4294901760, %v6691_v49 }
 0x1f0   :  { %5239 = vmatpush3.msra.mxu0 %v6671_v47  ;;  %v6703_v32 = vsub.f32 %v2957_v21, %v6693_v36  ;;  %v6805_v21 = vand.u32 4294901760, %v6796_v63  ;;  %v3178_v12 = vand.u32 4294901760, %v3177_v52 }
 0x1f1   :  { %5204 = vmatmul.mubr.f32.gmra.mxu0 %v6537_v61  ;;  %v6688_v61 = vand.u32 4294901760, %v6679_v54  ;;  %5240 = vmatprep.subr.mxu0 %v6681_v33  ;;  %v3121_v35 = vsub.f32 %v6691_v49, %v6700_v28 }
 0x1f2   :  { %5241 = vmatpush3.msra.mxu0 %v6681_v33  ;;  %v6712_v5 = vand.u32 4294901760, %v6703_v32  ;;  %7212 = vst [vmem:[#allocation48_spill] sm:$0xff] %v6805_v21  ;;  %v3184_v26 = vsub.f32 %v6796_v63, %v6805_v21 }
 0x1f3   :  { %v3114_v0 = vsub.f32 %v6679_v54, %v6688_v61  ;;  %5242 = vmatprep.subr.mxu0 %v6693_v36  ;;  %v3122_v27 = vand.u32 4294901760, %v3121_v35 }
 0x1f4   :  { %5243 = vmatpush3.msra.mxu0 %v6693_v36  ;;  %v3128_v10 = vsub.f32 %v6703_v32, %v6712_v5 }
 0x1f5   :  { %v3115_v13 = vand.u32 4294901760, %v3114_v0  ;;  %5244 = vmatprep.subr.mxu0 %v6706_v37  ;;  %v3185_v0 = vand.u32 4294901760, %v3184_v26 }
 0x1f6   :  { %5245 = vmatpush3.msra.mxu0 %v6706_v37  ;;  %v3129_v40 = vand.u32 4294901760, %v3128_v10 }
 0x1f7   :  { %5268 = vmatprep.subr.mxu1 %v3115_v13  ;;  %5246 = vmatprep.subr.mxu0 %v6714_v14 }
 0x1f8   :  { %5269 = vmatpush3.msra.mxu1 %v3115_v13  ;;  %5247 = vmatpush3.msra.mxu0 %v6714_v14 }
 0x1f9   :  { %5270 = vmatprep.subr.mxu1 %v3122_v27  ;;  %5248 = vmatprep.subr.mxu0 %v6725_v24 }
 0x1fa   :  { %5271 = vmatpush3.msra.mxu1 %v3122_v27  ;;  %5249 = vmatpush3.msra.mxu0 %v6725_v24 }
 0x1fb   :  { %5272 = vmatprep.subr.mxu1 %v3129_v40  ;;  %5250 = vmatprep.subr.mxu0 %v6738_v1 }
 0x1fc   :  { %5273 = vmatpush3.msra.mxu1 %v3129_v40  ;;  %5251 = vmatpush3.msra.mxu0 %v6738_v1 }
 0x1fd   :  { %5274 = vmatprep.subr.mxu1 %v3136_v15  ;;  %5252 = vmatprep.subr.mxu0 %v6752_v7 }
 0x1fe   :  { %5275 = vmatpush3.msra.mxu1 %v3136_v15  ;;  %5253 = vmatpush3.msra.mxu0 %v6752_v7 }
 0x1ff   :  { %5276 = vmatprep.subr.mxu1 %v3143_v6  ;;  %5254 = vmatprep.subr.mxu0 %v6765_v17 }
 0x200   :  { %5277 = vmatpush3.msra.mxu1 %v3143_v6  ;;  %5255 = vmatpush3.msra.mxu0 %v6765_v17 }
 0x201   :  { %5278 = vmatprep.subr.mxu1 %v3150_v4  ;;  %5256 = vmatprep.subr.mxu0 %v6773_v56 }
 0x202   :  { %5279 = vmatpush3.msra.mxu1 %v3150_v4  ;;  %5257 = vmatpush3.msra.mxu0 %v6773_v56 }
 0x203   :  { %5280 = vmatprep.subr.mxu1 %v3157_v34  ;;  %5258 = vmatprep.subr.mxu0 %v6785_v55 }
 0x204   :  { %5281 = vmatpush3.msra.mxu1 %v3157_v34  ;;  %5259 = vmatpush3.msra.mxu0 %v6785_v55 }
 0x205   :  { %5282 = vmatprep.subr.mxu1 %v3164_v41  ;;  %5296 = vmatprep.subr.mxu0 %v6669_v50 }
 0x206   :  { %5283 = vmatpush3.msra.mxu1 %v3164_v41 }
 0x207   :  { %5284 = vmatprep.subr.mxu1 %v3171_v62 }
 0x208   :  { %5285 = vmatpush3.msra.mxu1 %v3171_v62 }
 0x209   :  { %5286 = vmatprep.subr.mxu1 %v3178_v12 }
 0x20a   :  { %5287 = vmatpush3.msra.mxu1 %v3178_v12 }
 0x20b   :  { %5288 = vmatprep.subr.mxu1 %v3185_v0 }
 0x20c   :  { %5289 = vmatpush3.msra.mxu1 %v3185_v0 }
 0x20d   :  { %5326 = vmatprep.subr.mxu1 %v6666_v60 }
 0x26f   :  { %v5112_v39 = vpop.f32.mrf.mxu1 }
 0x271   :  { %v2450_v13 = vpop.f32.mrf.mxu1 }
 0x274   :  { %v5115_v16 = vpop.f32.mrf.mxu1 }
 0x276   :  { %v2462_v10 = vpop.f32.mrf.mxu1 }
 0x277   :  { %v5082_v35 = vpop.f32.mrf.mxu0 }
 0x278   :  { %v2300_v53 = vadd.f32 %v5082_v35, %v4220_v48 }
 0x279   :  { %v2289_v27 = vpop.f32.mrf.mxu0 }
 0x27a   :  { %v2290_v25 = vadd.f32 %v4220_v48, %v2289_v27  ;;  %v2457_v11 = vadd.f32 %v5112_v39, %v2300_v53 }
 0x27c   :  { %v2451_v38 = vadd.f32 %v2450_v13, %v2290_v25 }
 0x27d   :  { %v5085_v30 = vpop.f32.mrf.mxu0 }
 0x27e   :  { %v2320_v4 = vadd.f32 %v5085_v30, %v4220_v48 }
 0x27f   :  { %v2309_v31 = vpop.f32.mrf.mxu0 }
 0x280   :  { %v2310_v2 = vadd.f32 %v4220_v48, %v2309_v31  ;;  %v2469_v12 = vadd.f32 %v5115_v16, %v2320_v4 }
 0x282   :  { %v2463_v21 = vadd.f32 %v2462_v10, %v2310_v2 }
 0x289   :  { %v5172_v40 = vpop.f32.mrf.mxu1 }
 0x28b   :  { %v2670_v9 = vpop.f32.mrf.mxu1 }
 0x28e   :  { %v5175_v6 = vpop.f32.mrf.mxu1 }
 0x290   :  { %v2686_v51 = vpop.f32.mrf.mxu1 }
 0x293   :  { %v5142_v15 = vpop.f32.mrf.mxu0 }
 0x294   :  { %v2572_v41 = vadd.f32 %v5142_v15, %v2457_v11 }
 0x295   :  { %v2564_v29 = vpop.f32.mrf.mxu0 }
 0x296   :  { %v2565_v62 = vadd.f32 %v2564_v29, %v2451_v38  ;;  %v2679_v59 = vadd.f32 %v5172_v40, %v2572_v41 }
 0x298   :  { %v5145_v34 = vpop.f32.mrf.mxu0  ;;  %v2671_v23 = vadd.f32 %v2670_v9, %v2565_v62 }
 0x299   :  { %v2586_v0 = vadd.f32 %v5145_v34, %v2469_v12 }
 0x29a   :  { %v2578_v26 = vpop.f32.mrf.mxu0 }
 0x29b   :  { %v2579_v35 = vadd.f32 %v2578_v26, %v2463_v21  ;;  %v2695_v53 = vadd.f32 %v5175_v6, %v2586_v0 }
 0x29d   :  { %v2687_v29 = vadd.f32 %v2686_v51, %v2579_v35 }
 0x2a5   :  { %v5232_v52 = vpop.f32.mrf.mxu1 }
 0x2a7   :  { %v2902_v45 = vpop.f32.mrf.mxu1 }
 0x2a9   :  { %v5235_v57 = vpop.f32.mrf.mxu1 }
 0x2ab   :  { %v2914_v40 = vpop.f32.mrf.mxu1 }
 0x2ad   :  { %v5202_v19 = vpop.f32.mrf.mxu0 }
 0x2ae   :  { %v2808_v22 = vadd.f32 %v5202_v19, %v2679_v59 }
 0x2af   :  { %v2801_v27 = vpop.f32.mrf.mxu0 }
 0x2b0   :  { %v2909_v30 = vadd.f32 %v5232_v52, %v2808_v22  ;;  %v2802_v39 = vadd.f32 %v2801_v27, %v2671_v23 }
 0x2b1   :  { %v5205_v31 = vpop.f32.mrf.mxu0 }
 0x2b2   :  { %v2925_v48 = vmax.f32 %v2909_v30, 0.0  ;;  %v2903_v13 = vadd.f32 %v2902_v45, %v2802_v39  ;;  %v2820_v15 = vadd.f32 %v5205_v31, %v2695_v53 }
 0x2b3   :  { %v2813_v16 = vpop.f32.mrf.mxu0 }
 0x2b4   :  { %v2924_v25 = vmax.f32 %v2903_v13, 0.0  ;;  %v2921_v4 = vadd.f32 %v5235_v57, %v2820_v15  ;;  %v2814_v10 = vadd.f32 %v2813_v16, %v2687_v29  ;;  %v2933_v11 = vrot.slane %v2925_v48, 2 }
 0x2b6   :  { %v2932_v34 = vrot.slane %v2924_v25, 2  ;;  %v2927_v21 = vmax.f32 %v2921_v4, 0.0  ;;  %v2915_v19 = vadd.f32 %v2914_v40, %v2814_v10 }
 0x2b8   :  { %v2934_v59 = vsel %vm1427_vm2, %v2932_v34, %v2933_v11  ;;  %v2937_v22 = vrot.slane %v2927_v21, 2  ;;  %v2926_v23 = vmax.f32 %v2915_v19, 0.0 }
 0x2b9   :  { %v2945_v9 = vmax.f32 %v2924_v25, %v2934_v59 }
 0x2ba   :  { %v2944_v6 = vsel %vm1427_vm2, %v2937_v22, %v2932_v34  ;;  %v2935_v2 = vrot.slane %v2926_v23, 2 }
 0x2bb   :  { %v2967_v45 = vsel %vm2193_vm3, %v2945_v9, 0  ;;  %v2948_v51 = vmax.f32 %v2927_v21, %v2944_v6 }
 0x2bc   :  { %v2936_v41 = vsel %vm1427_vm2, %v2933_v11, %v2935_v2  ;;  %v2938_v57 = vsel %vm1427_vm2, %v2935_v2, %v2937_v22  ;;  %v6817_v38 = vand.u32 4294901760, %v2967_v45 }
 0x2bd   :  { %v2976_v52 = vsel %vm2193_vm3, %v2948_v51, 0  ;;  %v2946_v62 = vmax.f32 %v2925_v48, %v2936_v41  ;;  %v2947_v12 = vmax.f32 %v2926_v23, %v2938_v57  ;;  %v5541_v41 = vmov 0.0  }
 0x2be   :  { %5290 = vmatprep.mubr.f32.mxu1 %v6817_v38  ;;  %v3056_v26 = vsub.f32 %v2967_v45, %v6817_v38  ;;  %v6822_v0 = vand.u32 4294901760, %v2976_v52 }
 0x2bf   :  { %v2970_v35 = vsel %vm2193_vm3, %v2946_v62, 0  ;;  %v2973_v27 = vsel %vm2193_vm3, %v2947_v12, 0 }
 0x2c0   :  { %v6826_v30 = vand.u32 4294901760, %v2970_v35  ;;  %v6828_v39 = vand.u32 4294901760, %v2973_v27  ;;  %v3057_v53 = vand.u32 4294901760, %v3056_v26  ;;  %v6838_v15 = vsub.f32 %v2976_v52, %v6822_v0 }
 0x2c2   :  { %5291 = vmatmul.mubr.f32.vlgmr.msra.gmra.mxu1 %v6826_v30  ;;  %v3058_v31 = vsub.f32 %v3056_v26, %v3057_v53  ;;  %v6832_v48 = vsub.f32 %v2970_v35, %v6826_v30  ;;  %v6835_v13 = vsub.f32 %v2973_v27, %v6828_v39  ;;  %v3087_v40 = vand.u32 4294901760, %v6838_v15 }
 0x2c3   :  { %5327 = vmatpush3.msra.mxu1 %v6666_v60  ;;  %5293 = vmatprep.mubr.f32.mxu1 %v6828_v39 }
 0x2c4   :  { %5328 = vmatprep.subr.mxu1 %v6671_v47  ;;  %v3059_v29 = vand.u32 4294901760, %v3058_v31  ;;  %v3067_v16 = vand.u32 4294901760, %v6832_v48  ;;  %v3077_v25 = vand.u32 4294901760, %v6835_v13  ;;  %v3088_v21 = vsub.f32 %v6838_v15, %v3087_v40 }
 0x2c5   :  { %5329 = vmatpush3.msra.mxu1 %v6671_v47 }
 0x2c6   :  { %5330 = vmatprep.subr.mxu1 %v6681_v33  ;;  %5260 = vmatprep.mubr.f32.mxu0 %v3059_v29  ;;  %v3068_v4 = vsub.f32 %v6832_v48, %v3067_v16  ;;  %v3078_v10 = vsub.f32 %v6835_v13, %v3077_v25  ;;  %v3089_v19 = vand.u32 4294901760, %v3088_v21 }
 0x2c7   :  { %5294 = vmatmul.mubr.f32.gmra.mxu1 %v6822_v0 }
 0x2c8   :  { %5331 = vmatpush3.msra.mxu1 %v6681_v33  ;;  %5350 = vmatprep.mubr.f32.mxu1 %v3057_v53  ;;  %v3069_v11 = vand.u32 4294901760, %v3068_v4  ;;  %v3079_v34 = vand.u32 4294901760, %v3078_v10  ;;  %v3716_v4 = vld [vmem:[#allocation4 + $0x68] sm:$0xff] }
 0x2c9   :  { %5332 = vmatprep.subr.mxu1 %v6693_v36  ;;  %v3719_v10 = vsel %vm3717_vm5, %v3716_v4, 0 }
 0x2ca   :  { %5333 = vmatpush3.msra.mxu1 %v6693_v36  ;;  %5261 = vmatmul.mubr.f32.vlgmr.msra.gmra.mxu0 %v3069_v11 }
 0x2cb   :  { %5334 = vmatprep.subr.mxu1 %v6706_v37  ;;  %5297 = vmatpush3.msra.mxu0 %v6669_v50  ;;  %v7214_v50 = vld [vmem:[#allocation45_spill] sm:$0xff] }
 0x2cc   :  { %5335 = vmatpush3.msra.mxu1 %v6706_v37  ;;  %5263 = vmatprep.mubr.f32.mxu0 %v3079_v34 }
 0x2cd   :  { %5298 = vmatprep.subr.mxu0 %v6679_v54  ;;  %5336 = vmatprep.subr.mxu1 %v6714_v14 }
 0x2ce   :  { %5299 = vmatpush3.msra.mxu0 %v6679_v54  ;;  %5337 = vmatpush3.msra.mxu1 %v6714_v14  ;;  %v7217_v54 = vld [vmem:[#allocation47_spill] sm:$0xff] }
 0x2cf   :  { %5300 = vmatprep.subr.mxu0 %v6691_v49  ;;  %5338 = vmatprep.subr.mxu1 %v6725_v24 }
 0x2d0   :  { %5264 = vmatmul.mubr.f32.gmra.mxu0 %v3089_v19  ;;  %5339 = vmatpush3.msra.mxu1 %v6725_v24 }
 0x2d1   :  { %5301 = vmatpush3.msra.mxu0 %v6691_v49  ;;  %5320 = vmatprep.mubr.f32.mxu0 %v3056_v26 }
 0x2d2   :  { %5302 = vmatprep.subr.mxu0 %v6703_v32  ;;  %5340 = vmatprep.subr.mxu1 %v6738_v1 }
 0x2d3   :  { %5303 = vmatpush3.msra.mxu0 %v6703_v32  ;;  %5341 = vmatpush3.msra.mxu1 %v6738_v1 }
 0x2d4   :  { %5304 = vmatprep.subr.mxu0 %v6717_v58  ;;  %5342 = vmatprep.subr.mxu1 %v6752_v7 }
 0x2d5   :  { %5305 = vmatpush3.msra.mxu0 %v6717_v58  ;;  %5343 = vmatpush3.msra.mxu1 %v6752_v7 }
 0x2d6   :  { %5306 = vmatprep.subr.mxu0 %v6723_v43  ;;  %5344 = vmatprep.subr.mxu1 %v6765_v17 }
 0x2d7   :  { %5307 = vmatpush3.msra.mxu0 %v6723_v43  ;;  %5345 = vmatpush3.msra.mxu1 %v6765_v17 }
 0x2d8   :  { %5308 = vmatprep.subr.mxu0 %v6736_v3  ;;  %5346 = vmatprep.subr.mxu1 %v6773_v56 }
 0x2d9   :  { %5309 = vmatpush3.msra.mxu0 %v6736_v3  ;;  %5347 = vmatpush3.msra.mxu1 %v6773_v56 }
 0x2da   :  { %5310 = vmatprep.subr.mxu0 %v6750_v42  ;;  %5348 = vmatprep.subr.mxu1 %v6785_v55 }
 0x2db   :  { %5311 = vmatpush3.msra.mxu0 %v6750_v42  ;;  %5349 = vmatpush3.msra.mxu1 %v6785_v55 }
 0x2dc   :  { %5312 = vmatprep.subr.mxu0 %v6762_v46  ;;  %5351 = vmatmul.mubr.f32.vlgmr.msra.gmra.mxu1 %v3067_v16 }
 0x2dd   :  { %5386 = vmatprep.subr.mxu1 %v6666_v60  ;;  %5313 = vmatpush3.msra.mxu0 %v6762_v46 }
 0x2de   :  { %5353 = vmatprep.mubr.f32.mxu1 %v3077_v25  ;;  %5387 = vmatpush3.msra.mxu1 %v6666_v60  ;;  %v7213_v60 = vld [vmem:[#allocation46_spill] sm:$0xff] }
 0x2df   :  { %5314 = vmatprep.subr.mxu0 %v6777_v44  ;;  %5388 = vmatprep.subr.mxu1 %v6671_v47 }
 0x2e0   :  { %5315 = vmatpush3.msra.mxu0 %v6777_v44  ;;  %5389 = vmatpush3.msra.mxu1 %v6671_v47  ;;  %v7215_v47 = vld [vmem:[#allocation49_spill] sm:$0xff] }
 0x2e1   :  { %5316 = vmatprep.subr.mxu0 %v6783_v20  ;;  %5354 = vmatmul.mubr.f32.gmra.mxu1 %v3087_v40  ;;  %v6959_v40 = vand.u32 4294901760, %v3719_v10 }
 0x2e2   :  { %5390 = vmatprep.subr.mxu1 %v6681_v33  ;;  %5317 = vmatpush3.msra.mxu0 %v6783_v20 }
 0x2e3   :  { %5391 = vmatpush3.msra.mxu1 %v6681_v33  ;;  %5410 = vmatprep.mubr.f32.mxu1 %v6817_v38  ;;  %v7218_v33 = vld [vmem:[#allocation51_spill] sm:$0xff]  ;;  %v6962_v21 = vsub.f32 %v3719_v10, %v6959_v40 }
 0x2e4   :  { %5318 = vmatprep.subr.mxu0 %v6796_v63  ;;  %5392 = vmatprep.subr.mxu1 %v6693_v36 }
 0x2e5   :  { %5319 = vmatpush3.msra.mxu0 %v6796_v63  ;;  %5393 = vmatpush3.msra.mxu1 %v6693_v36 }
 0x2e6   :  { %5321 = vmatmul.mubr.f32.vlgmr.msra.gmra.mxu0 %v6832_v48  ;;  %5356 = vmatprep.subr.mxu0 %v6676_v18 }
 0x2e7   :  { %5394 = vmatprep.subr.mxu1 %v6706_v37  ;;  %5323 = vmatprep.mubr.f32.mxu0 %v6835_v13 }
 0x2e8   :  { %5357 = vmatpush3.msra.mxu0 %v6676_v18  ;;  %5395 = vmatpush3.msra.mxu1 %v6706_v37  ;;  %v7216_v18 = vld [vmem:[#allocation44_spill] sm:$0xff] }
 0x2e9   :  { %5358 = vmatprep.subr.mxu0 %v6688_v61  ;;  %5396 = vmatprep.subr.mxu1 %v6714_v14 }
 0x2ea   :  { %5359 = vmatpush3.msra.mxu0 %v6688_v61  ;;  %5397 = vmatpush3.msra.mxu1 %v6714_v14  ;;  %v7219_v61 = vld [vmem:[#allocation48_spill] sm:$0xff] }
 0x2eb   :  { %5324 = vmatmul.mubr.f32.gmra.mxu0 %v6838_v15  ;;  %5360 = vmatprep.subr.mxu0 %v6700_v28 }
 0x2ec   :  { %5398 = vmatprep.subr.mxu1 %v6725_v24  ;;  %5361 = vmatpush3.msra.mxu0 %v6700_v28 }
 0x2ed   :  { %5380 = vmatprep.mubr.f32.mxu0 %v6817_v38  ;;  %5399 = vmatpush3.msra.mxu1 %v6725_v24  ;;  %v4221_v24 = vld [vmem:[#allocation4 + $0x60] ss:$0 sm:$0xff] }
 0x2ee   :  { %5362 = vmatprep.subr.mxu0 %v6712_v5  ;;  %5400 = vmatprep.subr.mxu1 %v6738_v1 }
 0x2ef   :  { %5363 = vmatpush3.msra.mxu0 %v6712_v5  ;;  %5401 = vmatpush3.msra.mxu1 %v6738_v1 }
 0x2f0   :  { %5364 = vmatprep.subr.mxu0 %v6729_v8  ;;  %5402 = vmatprep.subr.mxu1 %v6752_v7 }
 0x2f1   :  { %5365 = vmatpush3.msra.mxu0 %v6729_v8  ;;  %5403 = vmatpush3.msra.mxu1 %v6752_v7 }
 0x2f2   :  { %5366 = vmatprep.subr.mxu0 %v7213_v60  ;;  %5404 = vmatprep.subr.mxu1 %v6765_v17 }
 0x2f3   :  { %5367 = vmatpush3.msra.mxu0 %v7213_v60  ;;  %5405 = vmatpush3.msra.mxu1 %v6765_v17 }
 0x2f4   :  { %5368 = vmatprep.subr.mxu0 %v7214_v50  ;;  %5406 = vmatprep.subr.mxu1 %v6773_v56 }
 0x2f5   :  { %5369 = vmatpush3.msra.mxu0 %v7214_v50  ;;  %5407 = vmatpush3.msra.mxu1 %v6773_v56 }
 0x2f6   :  { %5370 = vmatprep.subr.mxu0 %v7215_v47  ;;  %5408 = vmatprep.subr.mxu1 %v6785_v55 }
 0x2f7   :  { %5371 = vmatpush3.msra.mxu0 %v7215_v47  ;;  %5409 = vmatpush3.msra.mxu1 %v6785_v55 }
 0x2f8   :  { %5372 = vmatprep.subr.mxu0 %v7216_v18  ;;  %5411 = vmatmul.mubr.f32.vlgmr.msra.gmra.mxu1 %v6826_v30 }
 0x2f9   :  { %5373 = vmatpush3.msra.mxu0 %v7216_v18  ;;  %5413 = vmatprep.mubr.f32.mxu1 %v6828_v39 }
 0x2fa   :  { %5374 = vmatprep.subr.mxu0 %v7217_v54  ;;  %5427 = vmatprep.subr.mxu1 %v5541_v41 }
 0x2fb   :  { %5375 = vmatpush3.msra.mxu0 %v7217_v54  ;;  %v3792_v54 = vand.u32 4294901760, %v6962_v21 }
 0x2fc   :  { %5376 = vmatprep.subr.mxu0 %v7218_v33  ;;  %5414 = vmatmul.mubr.f32.gmra.mxu1 %v6822_v0 }
 0x2fd   :  { %5377 = vmatpush3.msra.mxu0 %v7218_v33  ;;  %5435 = vmatprep.mubr.msk.f32.mxu1 %vm5543_vm4, %v5541_v41 }
 0x2fe   :  { %5378 = vmatprep.subr.mxu0 %v7219_v61 }
 0x2ff   :  { %5379 = vmatpush3.msra.mxu0 %v7219_v61 }
 0x300   :  { %5381 = vmatmul.mubr.f32.vlgmr.msra.gmra.mxu0 %v6826_v30  ;;  %5416 = vmatprep.subr.mxu0 %v5541_v41 }
 0x301   :  { %5383 = vmatprep.mubr.f32.mxu0 %v6828_v39 }
 0x304   :  { %5384 = vmatmul.mubr.f32.gmra.mxu0 %v6822_v0 }
 0x305   :  { %5424 = vmatprep.mubr.msk.f32.mxu0 %vm5543_vm4, %v5541_v41 }
 0x382   :  { %v5292_v49 = vpop.f32.mrf.mxu1 }
 0x384   :  { %v3222_v28 = vpop.f32.mrf.mxu1 }
 0x387   :  { %v5295_v37 = vpop.f32.mrf.mxu1 }
 0x389   :  { %v3234_v14 = vpop.f32.mrf.mxu1 }
 0x38a   :  { %v5262_v36 = vpop.f32.mrf.mxu0 }
 0x38b   :  { %v3072_v1 = vadd.f32 %v5262_v36, %v4221_v24 }
 0x38c   :  { %v3061_v32 = vpop.f32.mrf.mxu0 }
 0x38d   :  { %v3062_v7 = vadd.f32 %v4221_v24, %v3061_v32  ;;  %v3229_v56 = vadd.f32 %v5292_v49, %v3072_v1 }
 0x38f   :  { %v3223_v63 = vadd.f32 %v3222_v28, %v3062_v7 }
 0x390   :  { %v5265_v5 = vpop.f32.mrf.mxu0 }
 0x391   :  { %v3092_v17 = vadd.f32 %v5265_v5, %v4221_v24 }
 0x392   :  { %v3081_v58 = vpop.f32.mrf.mxu0 }
 0x393   :  { %v3082_v20 = vadd.f32 %v4221_v24, %v3081_v58  ;;  %v3241_v23 = vadd.f32 %v5295_v37, %v3092_v17  ;;  %v3793_v37 = vsub.f32 %v6962_v21, %v3792_v54 }
 0x395   :  { %v3235_v45 = vadd.f32 %v3234_v14, %v3082_v20 }
 0x39c   :  { %v5352_v43 = vpop.f32.mrf.mxu1 }
 0x39e   :  { %v3442_v3 = vpop.f32.mrf.mxu1 }
 0x3a1   :  { %v5355_v46 = vpop.f32.mrf.mxu1 }
 0x3a3   :  { %v3458_v59 = vpop.f32.mrf.mxu1 }
 0x3a6   :  { %v5322_v8 = vpop.f32.mrf.mxu0 }
 0x3a7   :  { %v3344_v55 = vadd.f32 %v5322_v8, %v3229_v56 }
 0x3a8   :  { %v3336_v42 = vpop.f32.mrf.mxu0 }
 0x3a9   :  { %v3337_v22 = vadd.f32 %v3336_v42, %v3223_v63  ;;  %v3451_v51 = vadd.f32 %v5352_v43, %v3344_v55 }
 0x3ab   :  { %v5325_v44 = vpop.f32.mrf.mxu0  ;;  %v3443_v62 = vadd.f32 %v3442_v3, %v3337_v22  ;;  %v3794_v3 = vand.u32 4294901760, %v3793_v37 }
 0x3ac   :  { %v3358_v2 = vadd.f32 %v5325_v44, %v3241_v23 }
 0x3ad   :  { %v3350_v9 = vpop.f32.mrf.mxu0 }
 0x3ae   :  { %v3351_v38 = vadd.f32 %v3350_v9, %v3235_v45  ;;  %v3467_v35 = vadd.f32 %v5355_v46, %v3358_v2 }
 0x3b0   :  { %v3459_v53 = vadd.f32 %v3458_v59, %v3351_v38 }
 0x3b8   :  { %v5412_v6 = vpop.f32.mrf.mxu1 }
 0x3ba   :  { %v3674_v12 = vpop.f32.mrf.mxu1 }
 0x3bc   :  { %v5415_v31 = vpop.f32.mrf.mxu1 }
 0x3be   :  { %v3686_v16 = vpop.f32.mrf.mxu1 }
 0x3c0   :  { %v5382_v57 = vpop.f32.mrf.mxu0 }
 0x3c1   :  { %v3580_v52 = vadd.f32 %v5382_v57, %v3451_v51 }
 0x3c2   :  { %v3573_v26 = vpop.f32.mrf.mxu0 }
 0x3c3   :  { %v3574_v0 = vadd.f32 %v3573_v26, %v3443_v62  ;;  %v3681_v27 = vadd.f32 %v5412_v6, %v3580_v52 }
 0x3c4   :  { %v5385_v30 = vpop.f32.mrf.mxu0 }
 0x3c5   :  { %v3592_v39 = vadd.f32 %v5385_v30, %v3467_v35  ;;  %3702 = vrot.lane.b32.xlu1 %v3681_v27, %s5542_s0  ;;  %v3675_v13 = vadd.f32 %v3674_v12, %v3574_v0 }
 0x3c6   :  { %v3585_v48 = vpop.f32.mrf.mxu0 }
 0x3c7   :  { %v3586_v15 = vadd.f32 %v3585_v48, %v3459_v53  ;;  %v3693_v29 = vadd.f32 %v5415_v31, %v3592_v39 }
 0x3c9   :  { %3706 = vrot.lane.b32.xlu0 %v3693_v29, %s5542_s0  ;;  %3700 = vrot.lane.b32.xlu1 %v3675_v13, %s5542_s0  ;;  %v3687_v25 = vadd.f32 %v3686_v16, %v3586_v15 }
 0x3cd   :  { %3704 = vrot.lane.b32.xlu0 %v3687_v25, %s5542_s0 }
 0x437   :  { %v3703_v11 = vpop.permute.xlu1 %3702 }
 0x438   :  { %v3713_v34 = vmul.f32 %v3703_v11, %v3681_v27 }
 0x43a   :  { %v6964_v50 = vand.u32 4294901760, %v3713_v34 }
 0x43b   :  { %v3707_v19 = vpop.permute.xlu0 %3706  ;;  %v3701_v60 = vpop.permute.xlu1 %3700 }
 0x43c   :  { %v3715_v47 = vmul.f32 %v3707_v19, %v3693_v29  ;;  %v3712_v18 = vmul.f32 %v3701_v60, %v3675_v13  ;;  %v3840_v36 = vsub.f32 %v3713_v34, %v6964_v50 }
 0x43e   :  { %v6967_v33 = vand.u32 4294901760, %v3715_v47  ;;  %v6969_v61 = vand.u32 4294901760, %v3712_v18  ;;  %v3841_v43 = vand.u32 4294901760, %v3840_v36 }
 0x43f   :  { %v3705_v49 = vpop.permute.xlu0 %3704 }
 0x440   :  { %v3826_v28 = vsub.f32 %v3715_v47, %v6967_v33  ;;  %v3714_v32 = vmul.f32 %v3705_v49, %v3687_v25  ;;  %5417 = vmatpush3.msra.mxu0 %v6967_v33  ;;  %v3847_v14 = vsub.f32 %v3712_v18, %v6969_v61  ;;  %v3842_v46 = vsub.f32 %v3840_v36, %v3841_v43 }
 0x441   :  { %5418 = vmatprep.subr.mxu0 %v5541_v41 }
 0x442   :  { %v3827_v5 = vand.u32 4294901760, %v3826_v28  ;;  %v3749_v58 = vand.u32 4294901760, %v3714_v32  ;;  %v3848_v1 = vand.u32 4294901760, %v3847_v14  ;;  %v3843_v20 = vand.u32 4294901760, %v3842_v46 }
 0x444   :  { %v3828_v24 = vsub.f32 %v3826_v28, %v3827_v5  ;;  %v3833_v8 = vsub.f32 %v3714_v32, %v3749_v58  ;;  %5419 = vmatpush3.msra.mxu0 %v3749_v58  ;;  %v3849_v56 = vsub.f32 %v3847_v14, %v3848_v1 }
 0x445   :  { %5420 = vmatprep.subr.mxu0 %v5541_v41 }
 0x446   :  { %v3834_v42 = vand.u32 4294901760, %v3833_v8  ;;  %5421 = vmatpush3.msra.mxu0 %v6964_v50  ;;  %v3829_v7 = vand.u32 4294901760, %v3828_v24  ;;  %v3850_v55 = vand.u32 4294901760, %v3849_v56 }
 0x447   :  { %5422 = vmatprep.subr.mxu0 %v5541_v41 }
 0x448   :  { %v3835_v17 = vsub.f32 %v3833_v8, %v3834_v42  ;;  %5423 = vmatpush3.msra.mxu0 %v6969_v61  ;;  %5428 = vmatpush3.msra.mxu1 %v3829_v7 }
 0x449   :  { %5438 = vmatprep.subr.mxu0 %v5541_v41  ;;  %5425 = vmatmul.mubr.f32.vlgmr.msra.gmra.mxu0 %v3794_v3 }
 0x44a   :  { %5439 = vmatpush3.msra.mxu0 %v3826_v28  ;;  %5429 = vmatprep.subr.mxu1 %v5541_v41  ;;  %v3836_v44 = vand.u32 4294901760, %v3835_v17 }
 0x44b   :  { %5440 = vmatprep.subr.mxu0 %v5541_v41  ;;  %5446 = vmatprep.mubr.msk.f32.mxu0 %vm5543_vm4, %v5541_v41 }
 0x44c   :  { %5430 = vmatpush3.msra.mxu1 %v3836_v44  ;;  %5441 = vmatpush3.msra.mxu0 %v3833_v8 }
 0x44d   :  { %5431 = vmatprep.subr.mxu1 %v5541_v41  ;;  %5442 = vmatprep.subr.mxu0 %v5541_v41 }
 0x44e   :  { %5432 = vmatpush3.msra.mxu1 %v3843_v20  ;;  %5443 = vmatpush3.msra.mxu0 %v3840_v36 }
 0x44f   :  { %5433 = vmatprep.subr.mxu1 %v5541_v41  ;;  %5444 = vmatprep.subr.mxu0 %v5541_v41 }
 0x450   :  { %5434 = vmatpush3.msra.mxu1 %v3850_v55  ;;  %5445 = vmatpush3.msra.mxu0 %v3847_v14 }
 0x451   :  { %5436 = vmatmul.mubr.f32.vlgmr.msra.gmra.mxu1 %v6959_v40  ;;  %5449 = vmatprep.subr.mxu1 %v5541_v41 }
 0x452   :  { %5460 = vmatprep.subr.mxu0 %v5541_v41  ;;  %5447 = vmatmul.mubr.f32.vlgmr.msra.gmra.mxu0 %v6962_v21 }
 0x453   :  { %5450 = vmatpush3.msra.mxu1 %v6967_v33  ;;  %5461 = vmatpush3.msra.mxu0 %v3827_v5 }
 0x454   :  { %5451 = vmatprep.subr.mxu1 %v5541_v41  ;;  %5462 = vmatprep.subr.mxu0 %v5541_v41 }
 0x455   :  { %5452 = vmatpush3.msra.mxu1 %v3749_v58  ;;  %5463 = vmatpush3.msra.mxu0 %v3834_v42 }
 0x456   :  { %5453 = vmatprep.subr.mxu1 %v5541_v41  ;;  %5464 = vmatprep.subr.mxu0 %v5541_v41 }
 0x457   :  { %5454 = vmatpush3.msra.mxu1 %v6964_v50  ;;  %5465 = vmatpush3.msra.mxu0 %v3841_v43 }
 0x458   :  { %5455 = vmatprep.subr.mxu1 %v5541_v41  ;;  %5466 = vmatprep.subr.mxu0 %v5541_v41 }
 0x459   :  { %5456 = vmatpush3.msra.mxu1 %v6969_v61  ;;  %5457 = vmatprep.mubr.msk.f32.mxu1 %vm5543_vm4, %v5541_v41 }
 0x45a   :  { %5467 = vmatpush3.msra.mxu0 %v3848_v1  ;;  %5458 = vmatmul.mubr.f32.vlgmr.msra.gmra.mxu1 %v3792_v54 }
 0x45b   :  { %5471 = vmatprep.subr.mxu1 %v5541_v41  ;;  %5468 = vmatprep.mubr.msk.f32.mxu0 %vm5543_vm4, %v5541_v41 }
 0x45c   :  { %5472 = vmatpush3.msra.mxu1 %v6967_v33  ;;  %5469 = vmatmul.mubr.f32.vlgmr.msra.gmra.mxu0 %v6959_v40 }
 0x45d   :  { %5473 = vmatprep.subr.mxu1 %v5541_v41  ;;  %5479 = vmatprep.mubr.msk.f32.mxu1 %vm5543_vm4, %v5541_v41 }
 0x45e   :  { %5474 = vmatpush3.msra.mxu1 %v3749_v58 }
 0x45f   :  { %5475 = vmatprep.subr.mxu1 %v5541_v41 }
 0x460   :  { %5476 = vmatpush3.msra.mxu1 %v6964_v50 }
 0x461   :  { %5477 = vmatprep.subr.mxu1 %v5541_v41 }
 0x462   :  { %5478 = vmatpush3.msra.mxu1 %v6969_v61 }
 0x463   :  { %5480 = vmatmul.mubr.f32.vlgmr.msra.gmra.mxu1 %v6959_v40 }
 0x509   :  { %v3796_v63 = vpop.f32.mrf.mxu0 }
 0x50b   :  { %v5426_v59 = vpop.f32.mrf.mxu0 }
 0x511   :  { %v3887_v22 = vpop.f32.mrf.mxu1 }
 0x512   :  { %v3967_v23 = vpop.f32.mrf.mxu0  ;;  %v3888_v2 = vadd.f32 %v3887_v22, %v3796_v63 }
 0x513   :  { %v5437_v9 = vpop.f32.mrf.mxu1 }
 0x514   :  { %v5448_v6 = vpop.f32.mrf.mxu0  ;;  %v3968_v51 = vadd.f32 %v3967_v23, %v3888_v2 }
 0x51a   :  { %v4044_v45 = vpop.f32.mrf.mxu1 }
 0x51b   :  { %v4045_v52 = vadd.f32 %v4044_v45, %v3968_v51 }
 0x51c   :  { %v5459_v57 = vpop.f32.mrf.mxu1  ;;  %v4127_v38 = vpop.f32.mrf.mxu0 }
 0x51d   :  { %v4128_v12 = vadd.f32 %v4127_v38, %v4045_v52 }
 0x51e   :  { %v5470_v62 = vpop.f32.mrf.mxu0 }
 0x523   :  { %v4202_v26 = vpop.f32.mrf.mxu1 }
 0x524   :  { %v4203_v41 = vadd.f32 %v4202_v26, %v4128_v12 }
 0x525   :  { %v5481_v0 = vpop.f32.mrf.mxu1 }
 0x526   :  { %v4206_v35 = vsub.f32 0.0, %v4203_v41 }
 0x528   :  { %v4207_v27 = vmul.f32 1.442695, %v4206_v35 }
 0x52a   :  { %5489 = vpow2.f32 %v4207_v27 }
 0x537   :  { %v5490_v30 = vpop.eup %5489 }
 0x538   :  { %v4209_v39 = vadd.f32 1.0, %v5490_v30 }
 0x53a   :  { %5491 = vrcp.f32 %v4209_v39 }
 0x547   :  { %v5492_v53 = vpop.eup %5491 }
 0x548   :  { %4212 = vst [vmem:[%s7028_s3] sm:$0xff] %v5492_v53 }
 0x549   :  { %4217 = vsyncpa [#allocation3], 1 }
 0x54a   :  { %4218 = vsyncpa [#allocation5], 1 }

</bundles_post_ra>
